<compile_context>
chip_gen: v7x
topology: tpu7x:2x2x1
jax: 0.10.0
libtpu: 0.0.40
codegen_flags: <defaults>
</compile_context>

<pallas_src>
import jax
import jax.numpy as jnp
from jax import lax
from jax.experimental import pallas as pl
from jax.experimental.pallas import tpu as pltpu

Backbone_f = 8   # feature width of the first conv
Input_c = 3      # input channels
KH = KW = 3      # conv kernel size
STRIDE_H = 2     # "keep_W": stride 2 along H, stride 1 along W
PAD = 1
BN_EPS = 1e-5


# ----------------------------------------------------------------------------
# In-kernel helper: one conv_keep_W block as a single im2col GEMM.
# ----------------------------------------------------------------------------
def _conv_keep_w_block(y, w2d, bias):
    """conv 3x3, stride (2,1), pad 1, + (BN-folded) bias, ReLU.

    y    : (N, H, W, Cin)       f32 value (unpadded activation)
    w2d  : (KH*KW*Cin, Cout)    f32 value (HWIO weights flattened, BN folded)
    bias : (1, Cout)            f32 value
    returns : (N, H//2, W, Cout) f32 value
    """
    n, h, w, cin = y.shape
    cout = w2d.shape[1]
    ho, wo = h // STRIDE_H, w
    hp, wp = h + 2 * PAD, w + 2 * PAD

    # Zero padding via value-level concatenates (contiguous, static slices only).
    zw = jnp.zeros((n, h, PAD, cin), jnp.float32)
    xp = jnp.concatenate([zw, y, zw], axis=2)            # pad W  -> (N, H,  Wp, Cin)
    zh = jnp.zeros((n, PAD, wp, cin), jnp.float32)
    xp = jnp.concatenate([zh, xp, zh], axis=1)           # pad H  -> (N, Hp, Wp, Cin)

    # Stride-2 row selection without strided slicing: split padded rows into
    # even/odd planes (reshape touches leading dims only -> layout free).
    xeo = xp.reshape(n, hp // 2, 2, wp, cin)
    even = xeo[:, :, 0]                                  # padded rows 0, 2, 4, ...
    odd = xeo[:, :, 1]                                   # padded rows 1, 3, 5, ...
    row_slabs = (even[:, 0:ho],                          # kh = 0 -> rows 2i
                 odd[:, 0:ho],                           # kh = 1 -> rows 2i + 1
                 even[:, 1:ho + 1])                      # kh = 2 -> rows 2i + 2

    # im2col: 9 contiguous taps, fused into ONE MXU GEMM with K = 9*Cin.
    taps = []
    for kh in range(KH):
        slab = row_slabs[kh]                             # (N, Ho, Wp, Cin)
        for kw in range(KW):
            taps.append(slab[:, :, kw:kw + wo, :])       # (N, Ho, Wo, Cin)
    patches = jnp.concatenate(taps, axis=-1)             # (N, Ho, Wo, 9*Cin)

    m = n * ho * wo                                      # batch folded into GEMM M
    acc = jnp.dot(patches.reshape(m, KH * KW * cin), w2d,
                  preferred_element_type=jnp.float32)    # (M, Cout)
    acc = jnp.maximum(acc + bias, 0.0)                   # f32 bias + ReLU epilogue
    return acc.reshape(n, ho, wo, cout)


def _backbone_kernel(x_ref, w1_ref, b1_ref, w2_ref, b2_ref, w3_ref, b3_ref, o_ref):
    y = x_ref[...].astype(jnp.float32)
    y = _conv_keep_w_block(y, w1_ref[...], b1_ref[...])
    y = _conv_keep_w_block(y, w2_ref[...], b2_ref[...])
    y = _conv_keep_w_block(y, w3_ref[...], b3_ref[...])
    o_ref[...] = y.astype(o_ref.dtype)


# ----------------------------------------------------------------------------
# Wrapper: single fused pallas_call over the whole backbone (grid = batch).
# ----------------------------------------------------------------------------
@jax.jit
def backbone_forward_pallas(x_nchw, params):
    x = jnp.transpose(x_nchw, (0, 2, 3, 1))              # NCHW -> NHWC
    n, h, w, cin = x.shape

    flat_args = []
    in_specs = [pl.BlockSpec((1, h, w, cin), lambda i: (i, 0, 0, 0))]
    ci, hh = cin, h
    for wgt, b in params:
        co = wgt.shape[-1]
        flat_args += [wgt.reshape(KH * KW * ci, co),     # weight reshape done once here
                      b.reshape(1, co)]
        in_specs += [pl.BlockSpec((KH * KW * ci, co), lambda i: (0, 0)),
                     pl.BlockSpec((1, co), lambda i: (0, 0))]
        ci, hh = co, hh // STRIDE_H
    c_out, h_out = ci, hh

    out_nhwc = pl.pallas_call(
        _backbone_kernel,
        out_shape=jax.ShapeDtypeStruct((n, h_out, w, c_out), jnp.float32),
        grid_spec=pltpu.PrefetchScalarGridSpec(
            num_scalar_prefetch=0,
            grid=(n,),
            in_specs=in_specs,
            out_specs=pl.BlockSpec((1, h_out, w, c_out), lambda i: (i, 0, 0, 0)),
        ),
        compiler_params=pltpu.CompilerParams(dimension_semantics=("parallel",)),
    )(x, *flat_args)

    return jnp.transpose(out_nhwc, (0, 3, 1, 2))         # NHWC -> NCHW


# ----------------------------------------------------------------------------
# Parameter construction (deterministic, synthetic) + BN folding
# ----------------------------------------------------------------------------
def make_layer_params(key, cin, cout):
    k = jax.random.split(key, 6)
    w = 0.1 * jax.random.normal(k[0], (KH, KW, cin, cout), jnp.float32)   # HWIO
    conv_b = 0.1 * jax.random.normal(k[1], (cout,), jnp.float32)
    gamma = 1.0 + 0.1 * jax.random.normal(k[2], (cout,), jnp.float32)
    beta = 0.1 * jax.random.normal(k[3], (cout,), jnp.float32)
    run_mean = 0.1 * jax.random.normal(k[4], (cout,), jnp.float32)
    run_var = 1.0 + 0.1 * jnp.abs(jax.random.normal(k[5], (cout,), jnp.float32))
    # Fold eval-mode BatchNorm into conv weight/bias.
    scale = gamma / jnp.sqrt(run_var + BN_EPS)
    w_folded = w * scale[None, None, None, :]
    b_folded = (conv_b - run_mean) * scale + beta
    return w_folded, b_folded


def backbone_params(key, inputd=Input_c):
    feature = Backbone_f
    dims = [(inputd, feature), (feature, 2 * feature), (2 * feature, 4 * feature)]
    keys = jax.random.split(key, len(dims))
    return [make_layer_params(k, ci, co) for k, (ci, co) in zip(keys, dims)]


# ----------------------------------------------------------------------------
# Pure-JAX (XLA conv) reference for correctness checking
# ----------------------------------------------------------------------------
def backbone_forward_ref(x_nchw, params):
    x = jnp.transpose(x_nchw, (0, 2, 3, 1))
    for w, b in params:
        x = lax.conv_general_dilated(
            x, w,
            window_strides=(STRIDE_H, 1),
            padding=((PAD, PAD), (PAD, PAD)),
            dimension_numbers=("NHWC", "HWIO", "NHWC"),
        )
        x = jnp.maximum(x + b[None, None, None, :], 0.0)
    return jnp.transpose(x, (0, 3, 1, 2))


# ----------------------------------------------------------------------------
if __name__ == "__main__":
    key = jax.random.PRNGKey(0)
    kx, kp = jax.random.split(key)

    # Small NCHW input, consistent with the module's 3-channel input.
    x = jax.random.normal(kx, (2, Input_c, 16, 16), jnp.float32)
    params = backbone_params(kp)

    out = jax.block_until_ready(backbone_forward_pallas(x, params))
    ref = jax.block_until_ready(backbone_forward_ref(x, params))

    assert out.shape == (2, 4 * Backbone_f, 2, 16), out.shape   # H: 16 -> 8 -> 4 -> 2
    assert jnp.allclose(out, ref, atol=1e-4, rtol=1e-4), float(jnp.max(jnp.abs(out - ref)))

    print("KERNEL_OK")
</pallas_src>

<mosaic_0001>
module attributes {stable_mosaic.version = 11 : i64} {
  func.func @_backbone_kernel(%arg0: i32, %arg1: memref<1x16x16x3xf32, #tpu.memory_space<vmem>>, %arg2: memref<27x8xf32, #tpu.memory_space<vmem>>, %arg3: memref<1x8xf32, #tpu.memory_space<vmem>>, %arg4: memref<72x16xf32, #tpu.memory_space<vmem>>, %arg5: memref<1x16xf32, #tpu.memory_space<vmem>>, %arg6: memref<144x32xf32, #tpu.memory_space<vmem>>, %arg7: memref<1x32xf32, #tpu.memory_space<vmem>>, %arg8: memref<1x2x16x32xf32, #tpu.memory_space<vmem>>) attributes {dimension_semantics = [#tpu.dimension_semantics<parallel>], iteration_bounds = array<i64: 2>, scalar_prefetch = 0 : i64, scratch_operands = 0 : i64, tpu.core_type = #tpu.core_type<tc>, window_params = [{transform_indices = @transform_0, window_bounds = array<i64: 1, 16, 16, 3>}, {pipeline_mode = #tpu.pipeline_mode<synchronous>, transform_indices = @transform_1, window_bounds = array<i64: 27, 8>}, {pipeline_mode = #tpu.pipeline_mode<synchronous>, transform_indices = @transform_2, window_bounds = array<i64: 1, 8>}, {pipeline_mode = #tpu.pipeline_mode<synchronous>, transform_indices = @transform_3, window_bounds = array<i64: 72, 16>}, {pipeline_mode = #tpu.pipeline_mode<synchronous>, transform_indices = @transform_4, window_bounds = array<i64: 1, 16>}, {pipeline_mode = #tpu.pipeline_mode<synchronous>, transform_indices = @transform_5, window_bounds = array<i64: 144, 32>}, {pipeline_mode = #tpu.pipeline_mode<synchronous>, transform_indices = @transform_6, window_bounds = array<i64: 1, 32>}, {transform_indices = @transform_7, window_bounds = array<i64: 1, 2, 16, 32>}]} {
    %c0 = arith.constant 0 : index
    %c0_0 = arith.constant 0 : index
    %c0_1 = arith.constant 0 : index
    %c0_2 = arith.constant 0 : index
    %0 = vector.load %arg1[%c0, %c0_0, %c0_1, %c0_2] : memref<1x16x16x3xf32, #tpu.memory_space<vmem>>, vector<1x16x16x3xf32>
    %c0_3 = arith.constant 0 : index
    %c0_4 = arith.constant 0 : index
    %1 = vector.load %arg2[%c0_3, %c0_4] : memref<27x8xf32, #tpu.memory_space<vmem>>, vector<27x8xf32>
    %c0_5 = arith.constant 0 : index
    %c0_6 = arith.constant 0 : index
    %2 = vector.load %arg3[%c0_5, %c0_6] : memref<1x8xf32, #tpu.memory_space<vmem>>, vector<1x8xf32>
    %cst = arith.constant 0.000000e+00 : f32
    %3 = vector.broadcast %cst : f32 to vector<1x16x1x3xf32>
    %4 = tpu.concatenate %3, %0, %3 in 2 : vector<1x16x1x3xf32>, vector<1x16x16x3xf32>, vector<1x16x1x3xf32> -> vector<1x16x18x3xf32>
    %cst_7 = arith.constant 0.000000e+00 : f32
    %5 = vector.broadcast %cst_7 : f32 to vector<1x1x18x3xf32>
    %6 = tpu.concatenate %5, %4, %5 in 1 : vector<1x1x18x3xf32>, vector<1x16x18x3xf32>, vector<1x1x18x3xf32> -> vector<1x18x18x3xf32>
    %7 = vector.shape_cast %6 : vector<1x18x18x3xf32> to vector<1x9x2x18x3xf32>
    %8 = vector.extract_strided_slice %7 {offsets = [0, 0, 0, 0, 0], sizes = [1, 9, 1, 18, 3], strides = [1, 1, 1, 1, 1]} : vector<1x9x2x18x3xf32> to vector<1x9x1x18x3xf32>
    %9 = vector.shape_cast %8 : vector<1x9x1x18x3xf32> to vector<1x9x18x3xf32>
    %10 = vector.extract_strided_slice %7 {offsets = [0, 0, 1, 0, 0], sizes = [1, 9, 1, 18, 3], strides = [1, 1, 1, 1, 1]} : vector<1x9x2x18x3xf32> to vector<1x9x1x18x3xf32>
    %11 = vector.shape_cast %10 : vector<1x9x1x18x3xf32> to vector<1x9x18x3xf32>
    %12 = vector.extract_strided_slice %9 {offsets = [0, 0, 0, 0], sizes = [1, 8, 18, 3], strides = [1, 1, 1, 1]} : vector<1x9x18x3xf32> to vector<1x8x18x3xf32>
    %13 = vector.extract_strided_slice %11 {offsets = [0, 0, 0, 0], sizes = [1, 8, 18, 3], strides = [1, 1, 1, 1]} : vector<1x9x18x3xf32> to vector<1x8x18x3xf32>
    %14 = vector.extract_strided_slice %9 {offsets = [0, 1, 0, 0], sizes = [1, 8, 18, 3], strides = [1, 1, 1, 1]} : vector<1x9x18x3xf32> to vector<1x8x18x3xf32>
    %15 = vector.extract_strided_slice %12 {offsets = [0, 0, 0, 0], sizes = [1, 8, 16, 3], strides = [1, 1, 1, 1]} : vector<1x8x18x3xf32> to vector<1x8x16x3xf32>
    %16 = vector.extract_strided_slice %12 {offsets = [0, 0, 1, 0], sizes = [1, 8, 16, 3], strides = [1, 1, 1, 1]} : vector<1x8x18x3xf32> to vector<1x8x16x3xf32>
    %17 = vector.extract_strided_slice %12 {offsets = [0, 0, 2, 0], sizes = [1, 8, 16, 3], strides = [1, 1, 1, 1]} : vector<1x8x18x3xf32> to vector<1x8x16x3xf32>
    %18 = vector.extract_strided_slice %13 {offsets = [0, 0, 0, 0], sizes = [1, 8, 16, 3], strides = [1, 1, 1, 1]} : vector<1x8x18x3xf32> to vector<1x8x16x3xf32>
    %19 = vector.extract_strided_slice %13 {offsets = [0, 0, 1, 0], sizes = [1, 8, 16, 3], strides = [1, 1, 1, 1]} : vector<1x8x18x3xf32> to vector<1x8x16x3xf32>
    %20 = vector.extract_strided_slice %13 {offsets = [0, 0, 2, 0], sizes = [1, 8, 16, 3], strides = [1, 1, 1, 1]} : vector<1x8x18x3xf32> to vector<1x8x16x3xf32>
    %21 = vector.extract_strided_slice %14 {offsets = [0, 0, 0, 0], sizes = [1, 8, 16, 3], strides = [1, 1, 1, 1]} : vector<1x8x18x3xf32> to vector<1x8x16x3xf32>
    %22 = vector.extract_strided_slice %14 {offsets = [0, 0, 1, 0], sizes = [1, 8, 16, 3], strides = [1, 1, 1, 1]} : vector<1x8x18x3xf32> to vector<1x8x16x3xf32>
    %23 = vector.extract_strided_slice %14 {offsets = [0, 0, 2, 0], sizes = [1, 8, 16, 3], strides = [1, 1, 1, 1]} : vector<1x8x18x3xf32> to vector<1x8x16x3xf32>
    %24 = tpu.concatenate %15, %16, %17, %18, %19, %20, %21, %22, %23 in 3 : vector<1x8x16x3xf32>, vector<1x8x16x3xf32>, vector<1x8x16x3xf32>, vector<1x8x16x3xf32>, vector<1x8x16x3xf32>, vector<1x8x16x3xf32>, vector<1x8x16x3xf32>, vector<1x8x16x3xf32>, vector<1x8x16x3xf32> -> vector<1x8x16x27xf32>
    %25 = vector.shape_cast %24 : vector<1x8x16x27xf32> to vector<128x27xf32>
    %cst_8 = arith.constant dense<0.000000e+00> : vector<128x8xf32>
    %26 = tpu.matmul %25, %1, %cst_8 {dimension_numbers = #tpu.dot_dimension_numbers<[1], [0], [0], [1], [0, 0, 1, 1], [], []>} : vector<128x27xf32>, vector<27x8xf32>, vector<128x8xf32> -> vector<128x8xf32>
    %27 = vector.broadcast %2 : vector<1x8xf32> to vector<128x8xf32>
    %28 = arith.addf %26, %27 : vector<128x8xf32>
    %cst_9 = arith.constant 0.000000e+00 : f32
    %29 = vector.broadcast %cst_9 : f32 to vector<128x8xf32>
    %30 = arith.maximumf %28, %29 : vector<128x8xf32>
    %31 = vector.shape_cast %30 : vector<128x8xf32> to vector<1x8x16x8xf32>
    %c0_10 = arith.constant 0 : index
    %c0_11 = arith.constant 0 : index
    %32 = vector.load %arg4[%c0_10, %c0_11] : memref<72x16xf32, #tpu.memory_space<vmem>>, vector<72x16xf32>
    %c0_12 = arith.constant 0 : index
    %c0_13 = arith.constant 0 : index
    %33 = vector.load %arg5[%c0_12, %c0_13] : memref<1x16xf32, #tpu.memory_space<vmem>>, vector<1x16xf32>
    %cst_14 = arith.constant 0.000000e+00 : f32
    %34 = vector.broadcast %cst_14 : f32 to vector<1x8x1x8xf32>
    %35 = tpu.concatenate %34, %31, %34 in 2 : vector<1x8x1x8xf32>, vector<1x8x16x8xf32>, vector<1x8x1x8xf32> -> vector<1x8x18x8xf32>
    %cst_15 = arith.constant 0.000000e+00 : f32
    %36 = vector.broadcast %cst_15 : f32 to vector<1x1x18x8xf32>
    %37 = tpu.concatenate %36, %35, %36 in 1 : vector<1x1x18x8xf32>, vector<1x8x18x8xf32>, vector<1x1x18x8xf32> -> vector<1x10x18x8xf32>
    %38 = vector.shape_cast %37 : vector<1x10x18x8xf32> to vector<1x5x2x18x8xf32>
    %39 = vector.extract_strided_slice %38 {offsets = [0, 0, 0, 0, 0], sizes = [1, 5, 1, 18, 8], strides = [1, 1, 1, 1, 1]} : vector<1x5x2x18x8xf32> to vector<1x5x1x18x8xf32>
    %40 = vector.shape_cast %39 : vector<1x5x1x18x8xf32> to vector<1x5x18x8xf32>
    %41 = vector.extract_strided_slice %38 {offsets = [0, 0, 1, 0, 0], sizes = [1, 5, 1, 18, 8], strides = [1, 1, 1, 1, 1]} : vector<1x5x2x18x8xf32> to vector<1x5x1x18x8xf32>
    %42 = vector.shape_cast %41 : vector<1x5x1x18x8xf32> to vector<1x5x18x8xf32>
    %43 = vector.extract_strided_slice %40 {offsets = [0, 0, 0, 0], sizes = [1, 4, 18, 8], strides = [1, 1, 1, 1]} : vector<1x5x18x8xf32> to vector<1x4x18x8xf32>
    %44 = vector.extract_strided_slice %42 {offsets = [0, 0, 0, 0], sizes = [1, 4, 18, 8], strides = [1, 1, 1, 1]} : vector<1x5x18x8xf32> to vector<1x4x18x8xf32>
    %45 = vector.extract_strided_slice %40 {offsets = [0, 1, 0, 0], sizes = [1, 4, 18, 8], strides = [1, 1, 1, 1]} : vector<1x5x18x8xf32> to vector<1x4x18x8xf32>
    %46 = vector.extract_strided_slice %43 {offsets = [0, 0, 0, 0], sizes = [1, 4, 16, 8], strides = [1, 1, 1, 1]} : vector<1x4x18x8xf32> to vector<1x4x16x8xf32>
    %47 = vector.extract_strided_slice %43 {offsets = [0, 0, 1, 0], sizes = [1, 4, 16, 8], strides = [1, 1, 1, 1]} : vector<1x4x18x8xf32> to vector<1x4x16x8xf32>
    %48 = vector.extract_strided_slice %43 {offsets = [0, 0, 2, 0], sizes = [1, 4, 16, 8], strides = [1, 1, 1, 1]} : vector<1x4x18x8xf32> to vector<1x4x16x8xf32>
    %49 = vector.extract_strided_slice %44 {offsets = [0, 0, 0, 0], sizes = [1, 4, 16, 8], strides = [1, 1, 1, 1]} : vector<1x4x18x8xf32> to vector<1x4x16x8xf32>
    %50 = vector.extract_strided_slice %44 {offsets = [0, 0, 1, 0], sizes = [1, 4, 16, 8], strides = [1, 1, 1, 1]} : vector<1x4x18x8xf32> to vector<1x4x16x8xf32>
    %51 = vector.extract_strided_slice %44 {offsets = [0, 0, 2, 0], sizes = [1, 4, 16, 8], strides = [1, 1, 1, 1]} : vector<1x4x18x8xf32> to vector<1x4x16x8xf32>
    %52 = vector.extract_strided_slice %45 {offsets = [0, 0, 0, 0], sizes = [1, 4, 16, 8], strides = [1, 1, 1, 1]} : vector<1x4x18x8xf32> to vector<1x4x16x8xf32>
    %53 = vector.extract_strided_slice %45 {offsets = [0, 0, 1, 0], sizes = [1, 4, 16, 8], strides = [1, 1, 1, 1]} : vector<1x4x18x8xf32> to vector<1x4x16x8xf32>
    %54 = vector.extract_strided_slice %45 {offsets = [0, 0, 2, 0], sizes = [1, 4, 16, 8], strides = [1, 1, 1, 1]} : vector<1x4x18x8xf32> to vector<1x4x16x8xf32>
    %55 = tpu.concatenate %46, %47, %48, %49, %50, %51, %52, %53, %54 in 3 : vector<1x4x16x8xf32>, vector<1x4x16x8xf32>, vector<1x4x16x8xf32>, vector<1x4x16x8xf32>, vector<1x4x16x8xf32>, vector<1x4x16x8xf32>, vector<1x4x16x8xf32>, vector<1x4x16x8xf32>, vector<1x4x16x8xf32> -> vector<1x4x16x72xf32>
    %56 = vector.shape_cast %55 : vector<1x4x16x72xf32> to vector<64x72xf32>
    %cst_16 = arith.constant dense<0.000000e+00> : vector<64x16xf32>
    %57 = tpu.matmul %56, %32, %cst_16 {dimension_numbers = #tpu.dot_dimension_numbers<[1], [0], [0], [1], [0, 0, 1, 1], [], []>} : vector<64x72xf32>, vector<72x16xf32>, vector<64x16xf32> -> vector<64x16xf32>
    %58 = vector.broadcast %33 : vector<1x16xf32> to vector<64x16xf32>
    %59 = arith.addf %57, %58 : vector<64x16xf32>
    %cst_17 = arith.constant 0.000000e+00 : f32
    %60 = vector.broadcast %cst_17 : f32 to vector<64x16xf32>
    %61 = arith.maximumf %59, %60 : vector<64x16xf32>
    %62 = vector.shape_cast %61 : vector<64x16xf32> to vector<1x4x16x16xf32>
    %c0_18 = arith.constant 0 : index
    %c0_19 = arith.constant 0 : index
    %63 = vector.load %arg6[%c0_18, %c0_19] : memref<144x32xf32, #tpu.memory_space<vmem>>, vector<144x32xf32>
    %c0_20 = arith.constant 0 : index
    %c0_21 = arith.constant 0 : index
    %64 = vector.load %arg7[%c0_20, %c0_21] : memref<1x32xf32, #tpu.memory_space<vmem>>, vector<1x32xf32>
    %cst_22 = arith.constant 0.000000e+00 : f32
    %65 = vector.broadcast %cst_22 : f32 to vector<1x4x1x16xf32>
    %66 = tpu.concatenate %65, %62, %65 in 2 : vector<1x4x1x16xf32>, vector<1x4x16x16xf32>, vector<1x4x1x16xf32> -> vector<1x4x18x16xf32>
    %cst_23 = arith.constant 0.000000e+00 : f32
    %67 = vector.broadcast %cst_23 : f32 to vector<1x1x18x16xf32>
    %68 = tpu.concatenate %67, %66, %67 in 1 : vector<1x1x18x16xf32>, vector<1x4x18x16xf32>, vector<1x1x18x16xf32> -> vector<1x6x18x16xf32>
    %69 = vector.shape_cast %68 : vector<1x6x18x16xf32> to vector<1x3x2x18x16xf32>
    %70 = vector.extract_strided_slice %69 {offsets = [0, 0, 0, 0, 0], sizes = [1, 3, 1, 18, 16], strides = [1, 1, 1, 1, 1]} : vector<1x3x2x18x16xf32> to vector<1x3x1x18x16xf32>
    %71 = vector.shape_cast %70 : vector<1x3x1x18x16xf32> to vector<1x3x18x16xf32>
    %72 = vector.extract_strided_slice %69 {offsets = [0, 0, 1, 0, 0], sizes = [1, 3, 1, 18, 16], strides = [1, 1, 1, 1, 1]} : vector<1x3x2x18x16xf32> to vector<1x3x1x18x16xf32>
    %73 = vector.shape_cast %72 : vector<1x3x1x18x16xf32> to vector<1x3x18x16xf32>
    %74 = vector.extract_strided_slice %71 {offsets = [0, 0, 0, 0], sizes = [1, 2, 18, 16], strides = [1, 1, 1, 1]} : vector<1x3x18x16xf32> to vector<1x2x18x16xf32>
    %75 = vector.extract_strided_slice %73 {offsets = [0, 0, 0, 0], sizes = [1, 2, 18, 16], strides = [1, 1, 1, 1]} : vector<1x3x18x16xf32> to vector<1x2x18x16xf32>
    %76 = vector.extract_strided_slice %71 {offsets = [0, 1, 0, 0], sizes = [1, 2, 18, 16], strides = [1, 1, 1, 1]} : vector<1x3x18x16xf32> to vector<1x2x18x16xf32>
    %77 = vector.extract_strided_slice %74 {offsets = [0, 0, 0, 0], sizes = [1, 2, 16, 16], strides = [1, 1, 1, 1]} : vector<1x2x18x16xf32> to vector<1x2x16x16xf32>
    %78 = vector.extract_strided_slice %74 {offsets = [0, 0, 1, 0], sizes = [1, 2, 16, 16], strides = [1, 1, 1, 1]} : vector<1x2x18x16xf32> to vector<1x2x16x16xf32>
    %79 = vector.extract_strided_slice %74 {offsets = [0, 0, 2, 0], sizes = [1, 2, 16, 16], strides = [1, 1, 1, 1]} : vector<1x2x18x16xf32> to vector<1x2x16x16xf32>
    %80 = vector.extract_strided_slice %75 {offsets = [0, 0, 0, 0], sizes = [1, 2, 16, 16], strides = [1, 1, 1, 1]} : vector<1x2x18x16xf32> to vector<1x2x16x16xf32>
    %81 = vector.extract_strided_slice %75 {offsets = [0, 0, 1, 0], sizes = [1, 2, 16, 16], strides = [1, 1, 1, 1]} : vector<1x2x18x16xf32> to vector<1x2x16x16xf32>
    %82 = vector.extract_strided_slice %75 {offsets = [0, 0, 2, 0], sizes = [1, 2, 16, 16], strides = [1, 1, 1, 1]} : vector<1x2x18x16xf32> to vector<1x2x16x16xf32>
    %83 = vector.extract_strided_slice %76 {offsets = [0, 0, 0, 0], sizes = [1, 2, 16, 16], strides = [1, 1, 1, 1]} : vector<1x2x18x16xf32> to vector<1x2x16x16xf32>
    %84 = vector.extract_strided_slice %76 {offsets = [0, 0, 1, 0], sizes = [1, 2, 16, 16], strides = [1, 1, 1, 1]} : vector<1x2x18x16xf32> to vector<1x2x16x16xf32>
    %85 = vector.extract_strided_slice %76 {offsets = [0, 0, 2, 0], sizes = [1, 2, 16, 16], strides = [1, 1, 1, 1]} : vector<1x2x18x16xf32> to vector<1x2x16x16xf32>
    %86 = tpu.concatenate %77, %78, %79, %80, %81, %82, %83, %84, %85 in 3 : vector<1x2x16x16xf32>, vector<1x2x16x16xf32>, vector<1x2x16x16xf32>, vector<1x2x16x16xf32>, vector<1x2x16x16xf32>, vector<1x2x16x16xf32>, vector<1x2x16x16xf32>, vector<1x2x16x16xf32>, vector<1x2x16x16xf32> -> vector<1x2x16x144xf32>
    %87 = vector.shape_cast %86 : vector<1x2x16x144xf32> to vector<32x144xf32>
    %cst_24 = arith.constant dense<0.000000e+00> : vector<32x32xf32>
    %88 = tpu.matmul %87, %63, %cst_24 {dimension_numbers = #tpu.dot_dimension_numbers<[1], [0], [0], [1], [0, 0, 1, 1], [], []>} : vector<32x144xf32>, vector<144x32xf32>, vector<32x32xf32> -> vector<32x32xf32>
    %89 = vector.broadcast %64 : vector<1x32xf32> to vector<32x32xf32>
    %90 = arith.addf %88, %89 : vector<32x32xf32>
    %cst_25 = arith.constant 0.000000e+00 : f32
    %91 = vector.broadcast %cst_25 : f32 to vector<32x32xf32>
    %92 = arith.maximumf %90, %91 : vector<32x32xf32>
    %93 = vector.shape_cast %92 : vector<32x32xf32> to vector<1x2x16x32xf32>
    %c0_26 = arith.constant 0 : index
    %c0_27 = arith.constant 0 : index
    %c0_28 = arith.constant 0 : index
    %c0_29 = arith.constant 0 : index
    %94 = vector.load %arg8[%c0_26, %c0_27, %c0_28, %c0_29] : memref<1x2x16x32xf32, #tpu.memory_space<vmem>>, vector<1x2x16x32xf32>
    tpu.vector_store %arg8[%c0_26, %c0_27, %c0_28, %c0_29], %93 {strides = array<i32>} : memref<1x2x16x32xf32, #tpu.memory_space<vmem>>, vector<1x2x16x32xf32>,
    return
  }
  func.func @transform_0(%arg0: i32) -> (i32, i32, i32, i32) {
    %c0_i32 = arith.constant 0 : i32
    %c0_i32_0 = arith.constant 0 : i32
    %c0_i32_1 = arith.constant 0 : i32
    %c0_i32_2 = arith.constant 0 : i32
    return %arg0, %c0_i32, %c0_i32_0, %c0_i32_1 : i32, i32, i32, i32
  }
  func.func @transform_1(%arg0: i32) -> (i32, i32) {
    %c0_i32 = arith.constant 0 : i32
    %c0_i32_0 = arith.constant 0 : i32
    %c0_i32_1 = arith.constant 0 : i32
    return %c0_i32, %c0_i32_0 : i32, i32
  }
  func.func @transform_2(%arg0: i32) -> (i32, i32) {
    %c0_i32 = arith.constant 0 : i32
    %c0_i32_0 = arith.constant 0 : i32
    %c0_i32_1 = arith.constant 0 : i32
    return %c0_i32, %c0_i32_0 : i32, i32
  }
  func.func @transform_3(%arg0: i32) -> (i32, i32) {
    %c0_i32 = arith.constant 0 : i32
    %c0_i32_0 = arith.constant 0 : i32
    %c0_i32_1 = arith.constant 0 : i32
    return %c0_i32, %c0_i32_0 : i32, i32
  }
  func.func @transform_4(%arg0: i32) -> (i32, i32) {
    %c0_i32 = arith.constant 0 : i32
    %c0_i32_0 = arith.constant 0 : i32
    %c0_i32_1 = arith.constant 0 : i32
    return %c0_i32, %c0_i32_0 : i32, i32
  }
  func.func @transform_5(%arg0: i32) -> (i32, i32) {
    %c0_i32 = arith.constant 0 : i32
    %c0_i32_0 = arith.constant 0 : i32
    %c0_i32_1 = arith.constant 0 : i32
    return %c0_i32, %c0_i32_0 : i32, i32
  }
  func.func @transform_6(%arg0: i32) -> (i32, i32) {
    %c0_i32 = arith.constant 0 : i32
    %c0_i32_0 = arith.constant 0 : i32
    %c0_i32_1 = arith.constant 0 : i32
    return %c0_i32, %c0_i32_0 : i32, i32
  }
  func.func @transform_7(%arg0: i32) -> (i32, i32, i32, i32) {
    %c0_i32 = arith.constant 0 : i32
    %c0_i32_0 = arith.constant 0 : i32
    %c0_i32_1 = arith.constant 0 : i32
    %c0_i32_2 = arith.constant 0 : i32
    return %arg0, %c0_i32, %c0_i32_0, %c0_i32_1 : i32, i32, i32, i32
  }
}

</mosaic_0001>

<bundles_post_ra>
// kernel: backbone_forward_pallas.1
= control target key start
LH: loop header
LB: loop body
LE: loop exit
PB: predicated region body
PF: predicated region fallthrough
CT: control target
= control target key end

     0   :  { %12 = vsyncpa [#allocation3], 0  ;;  %s4043_s0 = inlined_call_operand.vmem [shape: f32[2,16,16,3], index: 0, kind: input, shape index: {}]   ;;  %s4044_s1 = inlined_call_operand.vmem [shape: f32[27,8], index: 1, kind: input, shape index: {}]   ;;  %s4045_s2 = inlined_call_operand.vmem [shape: f32[1,8], index: 2, kind: input, shape index: {}]   ;;  %s4046_s3 = inlined_call_operand.vmem [shape: f32[72,16], index: 3, kind: input, shape index: {}]   ;;  %s4047_s4 = inlined_call_operand.vmem [shape: f32[1,16], index: 4, kind: input, shape index: {}]   ;;  %s4048_s5 = inlined_call_operand.vmem [shape: f32[144,32], index: 5, kind: input, shape index: {}]   ;;  %s4049_s6 = inlined_call_operand.vmem [shape: f32[1,32], index: 6, kind: input, shape index: {}]   ;;  %s4050_s7 = inlined_call_operand.hbm [shape: f32[2,2,16,32], index: 7, kind: output, shape index: {}]  }
   0x1   :  { %14 = vsyncpa [#allocation3 + $0x1], 0  ;;  %s2802_s24 = smov 0   ;;  %s2804_s25 = smov 0  }
   0x2   :  { %s2806_s26 = smov 0   ;;  %s2808_s27 = smov 0  }
   0x3 LB: > { %s2823_s28 = sadd.s32 4294967295, %s2737_s27   ;;  %s2371_s29 = sadd.s32 4294967294, %s2737_s27   ;;  %s2737_s27 = sphi %s2808_s27, %s4064_s27   ;;  %s2733_s26 = sphi %s2806_s26, %s4063_s26   ;;  %s2729_s25 = sphi %s2804_s25, %s4062_s25   ;;  %s2725_s24 = sphi %s2802_s24, %s4061_s24  }
   0x4   : > { %s2827_s30 = sadd.s32 1, %s2737_s27   ;;  %s179_s8 = sadd.s32 1, %s2733_s26 }
   0x5   : > { %s176_s9 = ssub.s32 %s2737_s27, %s2827_s30  ;;  %p189_p0 = scmp.ne.s32.totalorder %s2733_s26, %s2729_s25 }
   0x6   : > { %p177_p1 = scmp.eq.s32.totalorder %s176_s9, 0  ;;  %p190_p2 = scmp.eq.s32.totalorder %s2823_s28, 1 }
   0x7   : > { %p195_p3 = scmp.ne.s32.totalorder %s2729_s25, %s2725_s24  ;;  %p196_p4 = scmp.eq.s32.totalorder %s2371_s29, 1 }
   0x8   : > { %s2838_s10 = scalar_select %p177_p1, %s2733_s26, %s179_s8  }
   0x9   : > { %p2840_p5 = por %p190_p2, %p189_p0  ;;  %p2844_p6 = por %p196_p4, %p195_p3 }
   0xa   : > { %p2374_p7 = scmp.ge.s32.totalorder %s2737_s27, 1  ;;  %p240_p8 = scmp.lt.s32.totalorder %s2737_s27, 3 }
   0xc   : > { %p241_p9 = pnand %p2374_p7, %p240_p8 }
   0xd   : > { %v2739_v0 = vmov (!%p241_p9), 0.0   ;;  %p272_p10 = scmp.lt.s32.totalorder (!%p241_p9), %s2823_s28, 1  ;;  %s2740_s13 = smov (!%p241_p9), 3   ;;  %vm346_vm0 = vcmask (!%p241_p9), 1040384   ;;  %vm481_vm1 = vcmask (!%p241_p9), 1046528   ;;  %vm564_vm2 = vcmask (!%p241_p9), 1045504  }
   0xe   : > { %244 = sbr.rel (%p241_p9) target bundleno = 1313 (0x521), region = 48  ;;  %v2850_v1 = vrot.slane (!%p241_p9), %v2739_v0, 1  ;;  %v2855_v2 = vrot.slane (!%p241_p9), %v2739_v0, 2  ;;  %s2741_s19 = smov (!%p241_p9), 6   ;;  %v309_v58 = vld [vmem:[%s4044_s1] sm:$0xff] (!%p241_p9)  ;;  %v310_v59 = vld [vmem:[%s4044_s1 + $0x8] sm:$0xff] (!%p241_p9) }
   0xf   : > { %s4053_s20 = smov (!%p241_p9), 9   ;;  %s2743_s21 = smov (!%p241_p9), 12   ;;  %v311_v62 = vld [vmem:[%s4044_s1 + $0x10] sm:$0xff] (!%p241_p9)  ;;  %v312_v63 = vld [vmem:[%s4044_s1 + $0x18] sm:$0x7] (!%p241_p9)  ;;  %v2516_v0 = vpack.c.bf16 (!%p241_p9), %v310_v59, %v309_v58  ;;  %vm1232_vm3 = vcmask (!%p241_p9), 1042432  }
  0x10   : > { %519 = vrot.lane.b32.xlu0 (!%p241_p9), %v2850_v1, %s2740_s13  ;;  %s2744_s22 = smov (!%p241_p9), 15   ;;  %s2745_s23 = smov (!%p241_p9), 18   ;;  %vm2748_vm4 = vmmov (!%p241_p9), 1   ;;  %vm1043_vm6 = vcmask (!%p241_p9), 23552   ;;  %vm1059_vm7 = vcmask (!%p241_p9), 48128   ;;  %vm1075_vm8 = vcmask (!%p241_p9), 72704  }
  0x11   : > { %s4051_s29 = smov (!%p241_p9), 21   ;;  %s2747_s8 = smov (!%p241_p9), 24   ;;  %2517 = vmatprep.subr.bf16.mxu1 (!%p241_p9), %v2516_v0  ;;  %vm2521_vm5 = vmpackc.low (!%p241_p9), %vm1232_vm3, %vm2748_vm4  ;;  %vm1092_vm9 = vcmask (!%p241_p9), 97280   ;;  %vm1109_vm10 = vcmask (!%p241_p9), 121856   ;;  %vm1126_vm11 = vcmask (!%p241_p9), 146432   ;;  %vm1143_vm12 = vcmask (!%p241_p9), 171008  }
  0x12   : > { %2519 = vmatpush3.bf16.msra.mxu1 (!%p241_p9), %v2516_v0  ;;  %vm1160_vm13 = vcmask (!%p241_p9), 195584   ;;  %vm1183_vm14 = vcmask (!%p241_p9), 220160   ;;  %s2753_s16 = smov (!%p241_p9), 48   ;;  %vm1764_vm15 = vcmask (!%p241_p9), 64512   ;;  %vm1772_vm3 = vcmask (!%p241_p9), 130048   ;;  %s2756_s17 = smov (!%p241_p9), 80  }
  0x13   : > { %vm1788_vm4 = vcmask (!%p241_p9), 261120  }
  0x14   : > { %602 = vrot.lane.b32.xlu0 (!%p241_p9), %v2855_v2, %s2741_s19 }
  0x15   : > { %s273_s14 = scalar_select %p272_p10, %s2823_s28, 1 }
  0x17   : > { %s2415_s15 = sshll.u32 %s273_s14, 8  ;;  %s2754_s14 = smov 56  }
  0x18   : > { %s2861_s18 = scalar_lea.vmem %s4043_s0, %s2415_s15  ;;  %s2755_s15 = smov 64  }
  0x19   : > { %v277_v3 = vld [vmem:[%s2861_s18] sm:$0xff]  ;;  %v278_v4 = vld [vmem:[%s2861_s18 + $0x8] sm:$0xff]  ;;  %v279_v5 = vld [vmem:[%s2861_s18 + $0x10] sm:$0xff] }
  0x1a   : > { %v347_v6 = vrot.slane %v277_v3, 7  ;;  %v348_v7 = vrot.slane %v278_v4, 7  ;;  %v280_v8 = vld [vmem:[%s2861_s18 + $0x18] sm:$0xff]  ;;  %v350_v9 = vrot.slane %v279_v5, 7  ;;  %v281_v36 = vld [vmem:[%s2861_s18 + $0x20] sm:$0xff]  ;;  %v282_v39 = vld [vmem:[%s2861_s18 + $0x28] sm:$0xff] }
  0x1b   : > { %v351_v10 = vrot.slane %v280_v8, 7  ;;  %v353_v38 = vrot.slane %v281_v36, 7  ;;  %v283_v40 = vld [vmem:[%s2861_s18 + $0x30] sm:$0xff]  ;;  %v284_v41 = vld [vmem:[%s2861_s18 + $0x38] sm:$0xff]  ;;  %v354_v42 = vrot.slane %v282_v39, 7 }
  0x1c   : > { %v434_v11 = vsel %vm346_vm0, 0.0, %v347_v6  ;;  %v349_v12 = vsel %vm346_vm0, %v347_v6, %v348_v7  ;;  %v450_v13 = vsel %vm346_vm0, %v348_v7, 0.0  ;;  %v2873_v14 = vsel %vm346_vm0, 0.0, %v350_v9 }
  0x1d   : > { %655 = vrot.lane.b32.xlu1 %v434_v11, %s4053_s20  ;;  %v711_v15 = vrot.slane %v434_v11, 1  ;;  %v712_v16 = vrot.slane %v349_v12, 1  ;;  %v714_v17 = vrot.slane %v450_v13, 1  ;;  %v2877_v18 = vsel %vm346_vm0, %v350_v9, %v351_v10 }
  0x1e   : > { %v484_v19 = vrot.slane %v2873_v14, 1  ;;  %v451_v20 = vsel %vm346_vm0, %v351_v10, 0.0  ;;  %v485_v22 = vrot.slane %v2877_v18, 1  ;;  %v799_v25 = vrot.slane %v434_v11, 2 }
  0x1f   : > { %v713_v21 = vsel %vm481_vm1, %v711_v15, %v712_v16  ;;  %v715_v23 = vsel %vm481_vm1, %v712_v16, %v714_v17  ;;  %v487_v24 = vrot.slane %v451_v20, 1  ;;  %v800_v27 = vrot.slane %v349_v12, 2  ;;  %v285_v15 = vld [vmem:[%s2861_s18 + $0x40] sm:$0xff] }
  0x20   : > { %751 = vrot.lane.b32.xlu0 %v713_v21, %s2743_s21  ;;  %v486_v26 = vsel %vm481_vm1, %v484_v19, %v485_v22  ;;  %v802_v29 = vrot.slane %v450_v13, 2  ;;  %v567_v31 = vrot.slane %v2873_v14, 2  ;;  %v568_v32 = vrot.slane %v2877_v18, 2  ;;  %v286_v19 = vld [vmem:[%s2861_s18 + $0x48] sm:$0xff]  ;;  %v288_v21 = vld [vmem:[%s2861_s18 + $0x58] sm:$0xff] }
  0x21   : > { %657 = vrot.lane.b32.xlu1 %v349_v12, %s4053_s20  ;;  %v488_v28 = vsel %vm481_vm1, %v485_v22, %v487_v24  ;;  %v801_v30 = vsel %vm564_vm2, %v799_v25, %v800_v27  ;;  %v570_v34 = vrot.slane %v451_v20, 2  ;;  %v436_v43 = vsel %vm346_vm0, 0.0, %v353_v38  ;;  %v287_v20 = vld [vmem:[%s2861_s18 + $0x50] sm:$0xff] }
  0x22   : > { %v803_v33 = vsel %vm564_vm2, %v800_v27, %v802_v29  ;;  %v569_v35 = vsel %vm564_vm2, %v567_v31, %v568_v32  ;;  %v356_v44 = vrot.slane %v283_v40, 7  ;;  %v357_v45 = vrot.slane %v284_v41, 7 }
  0x23   : > { %v571_v37 = vsel %vm564_vm2, %v568_v32, %v570_v34  ;;  %v355_v46 = vsel %vm346_vm0, %v353_v38, %v354_v42  ;;  %v716_v47 = vrot.slane %v436_v43, 1  ;;  %v452_v54 = vsel %vm346_vm0, %v354_v42, 0.0 }
  0x24   : > { %753 = vrot.lane.b32.xlu0 %v715_v23, %s2743_s21  ;;  %v717_v48 = vrot.slane %v355_v46, 1  ;;  %v2913_v49 = vsel %vm346_vm0, %v356_v44, %v357_v45  ;;  %v2916_v50 = vsel %vm346_vm0, 0.0, %v356_v44  ;;  %v804_v55 = vrot.slane %v436_v43, 2 }
  0x25   : > { %521 = vrot.lane.b32.xlu1 %v486_v26, %s2740_s13  ;;  %v489_v51 = vrot.slane %v2916_v50, 1  ;;  %v490_v52 = vrot.slane %v2913_v49, 1  ;;  %v805_v56 = vrot.slane %v355_v46, 2  ;;  %v719_v60 = vrot.slane %v452_v54, 1 }
  0x26   : > { %v718_v53 = vsel %vm481_vm1, %v716_v47, %v717_v48  ;;  %v453_v61 = vsel %vm346_vm0, %v357_v45, 0.0  ;;  %v2520_v6 = vpack.c.bf16 %v312_v63, %v311_v62  ;;  %v807_v8 = vrot.slane %v452_v54, 2 }
  0x27   : > { %v491_v57 = vsel %vm481_vm1, %v489_v51, %v490_v52  ;;  %v806_v3 = vsel %vm564_vm2, %v804_v55, %v805_v56  ;;  %v492_v4 = vrot.slane %v453_v61, 1  ;;  %v720_v5 = vsel %vm481_vm1, %v717_v48, %v719_v60  ;;  %v290_v55 = vld [vmem:[%s2861_s18 + $0x68] sm:$0xff] }
  0x28   : > { %523 = vrot.lane.b32.xlu0 %v488_v28, %s2740_s13  ;;  %2522 = vmatprep.subr.msk.bf16.mxu1 %vm2521_vm5, %v2520_v6  ;;  %v572_v9 = vrot.slane %v2916_v50, 2  ;;  %v573_v10 = vrot.slane %v2913_v49, 2  ;;  %v808_v11 = vsel %vm564_vm2, %v805_v56, %v807_v8  ;;  %v575_v12 = vrot.slane %v453_v61, 2  ;;  %v291_v56 = vld [vmem:[%s2861_s18 + $0x70] sm:$0xff] }
  0x29   : > { %839 = vrot.lane.b32.xlu1 %v801_v30, %s2744_s22  ;;  %v493_v7 = vsel %vm481_vm1, %v490_v52, %v492_v4  ;;  %2525 = vmatpush3.bf16.msk.msra.mxu1 %vm2521_vm5, %v2520_v6  ;;  %v359_v17 = vrot.slane %v285_v15, 7  ;;  %v360_v22 = vrot.slane %v286_v19, 7  ;;  %v362_v24 = vrot.slane %v287_v20, 7  ;;  %v289_v52 = vld [vmem:[%s2861_s18 + $0x60] sm:$0xff] }
  0x2a   : > { %v574_v13 = vsel %vm564_vm2, %v572_v9, %v573_v10  ;;  %v576_v16 = vsel %vm564_vm2, %v573_v10, %v575_v12  ;;  %v363_v25 = vrot.slane %v288_v21, 7  ;;  %v365_v54 = vrot.slane %v289_v52, 7 }
  0x2b   : > { %v438_v23 = vsel %vm346_vm0, 0.0, %v359_v17  ;;  %v2972_v30 = vsel %vm346_vm0, 0.0, %v362_v24  ;;  %v454_v34 = vsel %vm346_vm0, %v360_v22, 0.0  ;;  %v366_v58 = vrot.slane %v290_v55, 7 }
  0x2c   : > { %841 = vrot.lane.b32.xlu0 %v803_v33, %s2744_s22  ;;  %v721_v27 = vrot.slane %v438_v23, 1  ;;  %v2969_v29 = vsel %vm346_vm0, %v362_v24, %v363_v25  ;;  %v494_v31 = vrot.slane %v2972_v30, 1  ;;  %v724_v38 = vrot.slane %v454_v34, 1 }
  0x2d   : > { %604 = vrot.lane.b32.xlu1 %v569_v35, %s2741_s19  ;;  %v495_v32 = vrot.slane %v2969_v29, 1  ;;  %v455_v39 = vsel %vm346_vm0, %v363_v25, 0.0  ;;  %v812_v44 = vrot.slane %v454_v34, 2  ;;  %v577_v45 = vrot.slane %v2972_v30, 2 }
  0x2e   : > { %v497_v41 = vrot.slane %v455_v39, 1  ;;  %v580_v48 = vrot.slane %v455_v39, 2  ;;  %v440_v59 = vsel %vm346_vm0, 0.0, %v365_v54  ;;  %v368_v60 = vrot.slane %v291_v56, 7 }
  0x2f   : > { %v367_v62 = vsel %vm346_vm0, %v365_v54, %v366_v58  ;;  %v726_v63 = vrot.slane %v440_v59, 1  ;;  %v456_v8 = vsel %vm346_vm0, %v366_v58, 0.0  ;;  %v814_v9 = vrot.slane %v440_v59, 2 }
  0x30   : > { %606 = vrot.lane.b32.xlu0 %v571_v37, %s2741_s19  ;;  %v727_v0 = vrot.slane %v367_v62, 1  ;;  %v3016_v4 = vsel %vm346_vm0, 0.0, %v368_v60  ;;  %v815_v10 = vrot.slane %v367_v62, 2  ;;  %v729_v12 = vrot.slane %v456_v8, 1 }
  0x31   : > { %888 = vrot.lane.b32.xlu1 %v2873_v14, %s2745_s23  ;;  %v817_v20 = vrot.slane %v456_v8, 2  ;;  %v582_v21 = vrot.slane %v3016_v4, 2  ;;  %vm1797_vm5 = vcmask 326656  }
  0x32   : > { %v816_v15 = vsel %vm564_vm2, %v814_v9, %v815_v10 }
  0x33   : > { %v818_v24 = vsel %vm564_vm2, %v815_v10, %v817_v20 }
  0x34   : > { %890 = vrot.lane.b32.xlu0 %v2877_v18, %s2745_s23 }
  0x35   : > { %659 = vrot.lane.b32.xlu1 %v436_v43, %s4053_s20  ;;  %v498_v43 = vsel %vm481_vm1, %v495_v32, %v497_v41 }
  0x38   : > { %661 = vrot.lane.b32.xlu0 %v355_v46, %s4053_s20  ;;  %s4058_s20 = smov 9   ;;  %v578_v46 = vrot.slane %v2969_v29, 2 }
  0x39   : > { %942 = vrot.lane.b32.xlu1 %v486_v26, %s4051_s29  ;;  %v361_v26 = vsel %vm346_vm0, %v359_v17, %v360_v22  ;;  %v730_v17 = vsel %vm481_vm1, %v727_v0, %v729_v12 }
  0x3a   : > { %v810_v36 = vrot.slane %v361_v26, 2  ;;  %v579_v51 = vsel %vm564_vm2, %v577_v45, %v578_v46 }
  0x3c   : > { %944 = vrot.lane.b32.xlu0 %v488_v28, %s4051_s29  ;;  %v722_v28 = vrot.slane %v361_v26, 1  ;;  %s4059_s29 = smov 21   ;;  %v813_v47 = vsel %vm564_vm2, %v810_v36, %v812_v44 }
  0x3d   : > { %755 = vrot.lane.b32.xlu1 %v718_v53, %s2743_s21  ;;  %v581_v53 = vsel %vm564_vm2, %v578_v46, %v580_v48 }
  0x3e   : > { %v723_v33 = vsel %vm481_vm1, %v721_v27, %v722_v28  ;;  %v725_v42 = vsel %vm481_vm1, %v722_v28, %v724_v38  ;;  %v293_v27 = vld [vmem:[%s2861_s18 + $0x80] sm:$0xff] }
  0x40   : > { %525 = vrot.lane.b32.xlu0 %v491_v57, %s2740_s13 }
  0x41   : > { %995 = vrot.lane.b32.xlu1 %v569_v35, %s2747_s8  ;;  %v809_v35 = vrot.slane %v438_v23, 2 }
  0x43   : > { %v811_v40 = vsel %vm564_vm2, %v809_v35, %v810_v36  ;;  %v295_v35 = vld [vmem:[%s2861_s18 + $0x90] sm:$0xff]  ;;  %v296_v36 = vld [vmem:[%s2861_s18 + $0x98] sm:$0xff] }
  0x44   : > { %843 = vrot.lane.b32.xlu0 %v806_v3, %s2744_s22  ;;  %v375_v41 = vrot.slane %v296_v36, 7  ;;  %v300_v36 = vld [vmem:[%s2861_s18 + $0xb8] sm:$0xff] }
  0x45   : > { %757 = vrot.lane.b32.xlu1 %v720_v5, %s2743_s21  ;;  %v499_v5 = vrot.slane %v3016_v4, 1 }
  0x48   : > { %527 = vrot.lane.b32.xlu0 %v493_v7, %s2740_s13 }
  0x49   : > { %997 = vrot.lane.b32.xlu1 %v571_v37, %s2747_s8  ;;  %v496_v37 = vsel %vm481_vm1, %v494_v31, %v495_v32  ;;  %v371_v32 = vrot.slane %v293_v27, 7 }
  0x4b   : > { %v442_v39 = vsel %vm346_vm0, 0.0, %v371_v32 }
  0x4c   : > { %845 = vrot.lane.b32.xlu0 %v808_v11, %s2744_s22  ;;  %v731_v44 = vrot.slane %v442_v39, 1  ;;  %v819_v58 = vrot.slane %v442_v39, 2 }
  0x4d   : > { %608 = vrot.lane.b32.xlu1 %v574_v13, %s2741_s19 }
  0x50   : > { %610 = vrot.lane.b32.xlu0 %v576_v16, %s2741_s19 }
  0x51   : > { %892 = vrot.lane.b32.xlu1 %v2916_v50, %s2745_s23 }
  0x54   : > { %894 = vrot.lane.b32.xlu0 %v2913_v49, %s2745_s23 }
  0x55   : > { %663 = vrot.lane.b32.xlu1 %v438_v23, %s4058_s20 }
  0x58   : > { %665 = vrot.lane.b32.xlu0 %v361_v26, %s4058_s20 }
  0x59   : > { %946 = vrot.lane.b32.xlu1 %v491_v57, %s4059_s29  ;;  %v292_v57 = vld [vmem:[%s2861_s18 + $0x78] sm:$0xff] }
  0x5a   : > { %v369_v61 = vrot.slane %v292_v57, 7 }
  0x5c   : > { %948 = vrot.lane.b32.xlu0 %v493_v7, %s4059_s29  ;;  %v3013_v3 = vsel %vm346_vm0, %v368_v60, %v369_v61  ;;  %v728_v7 = vsel %vm481_vm1, %v726_v63, %v727_v0  ;;  %v459_v63 = vsel %vm346_vm0, %v375_v41, 0.0 }
  0x5d   : > { %759 = vrot.lane.b32.xlu1 %v723_v33, %s2743_s21  ;;  %v500_v6 = vrot.slane %v3013_v3, 1  ;;  %v583_v22 = vrot.slane %v3013_v3, 2  ;;  %v294_v33 = vld [vmem:[%s2861_s18 + $0x88] sm:$0xff]  ;;  %v590_v20 = vrot.slane %v459_v63, 2 }
  0x5f   : > { %v501_v11 = vsel %vm481_vm1, %v499_v5, %v500_v6  ;;  %v584_v26 = vsel %vm564_vm2, %v582_v21, %v583_v22 }
  0x60   : > { %529 = vrot.lane.b32.xlu0 %v496_v37, %s2740_s13 }
  0x61   : > { %999 = vrot.lane.b32.xlu1 %v574_v13, %s2747_s8  ;;  %v457_v13 = vsel %vm346_vm0, %v369_v61, 0.0 }
  0x62   : > { %v585_v25 = vrot.slane %v457_v13, 2 }
  0x64   : > { %847 = vrot.lane.b32.xlu0 %v811_v40, %s2744_s22  ;;  %v586_v31 = vsel %vm564_vm2, %v583_v22, %v585_v25  ;;  %v374_v40 = vrot.slane %v295_v35, 7  ;;  %v297_v25 = vld [vmem:[%s2861_s18 + $0xa0] sm:$0xff] }
  0x65   : > { %761 = vrot.lane.b32.xlu1 %v725_v42, %s2743_s21 }
  0x66   : > { %v3072_v48 = vsel %vm346_vm0, 0.0, %v374_v40 }
  0x67   : > { %v504_v52 = vrot.slane %v3072_v48, 1 }
  0x68   : > { %531 = vrot.lane.b32.xlu0 %v498_v43, %s2740_s13 }
  0x69   : > { %1001 = vrot.lane.b32.xlu1 %v576_v16, %s2747_s8  ;;  %v502_v16 = vrot.slane %v457_v13, 1  ;;  %v587_v13 = vrot.slane %v3072_v48, 2 }
  0x6b   : > { %v503_v19 = vsel %vm481_vm1, %v500_v6, %v502_v16  ;;  %v507_v6 = vrot.slane %v459_v63, 1 }
  0x6c   : > { %849 = vrot.lane.b32.xlu0 %v813_v47, %s2744_s22  ;;  %v3069_v47 = vsel %vm346_vm0, %v374_v40, %v375_v41 }
  0x6d   : > { %612 = vrot.lane.b32.xlu1 %v579_v51, %s2741_s19 }
  0x70   : > { %614 = vrot.lane.b32.xlu0 %v581_v53, %s2741_s19 }
  0x71   : > { %896 = vrot.lane.b32.xlu1 %v2972_v30, %s2745_s23 }
  0x74   : > { %898 = vrot.lane.b32.xlu0 %v2969_v29, %s2745_s23 }
  0x75   : > { %667 = vrot.lane.b32.xlu1 %v440_v59, %s4058_s20 }
  0x78   : > { %669 = vrot.lane.b32.xlu0 %v367_v62, %s4058_s20 }
  0x79   : > { %950 = vrot.lane.b32.xlu1 %v496_v37, %s4059_s29  ;;  %v372_v37 = vrot.slane %v294_v33, 7 }
  0x7b   : > { %v458_v57 = vsel %vm346_vm0, %v372_v37, 0.0 }
  0x7c   : > { %952 = vrot.lane.b32.xlu0 %v498_v43, %s4059_s29  ;;  %v373_v43 = vsel %vm346_vm0, %v371_v32, %v372_v37  ;;  %v734_v62 = vrot.slane %v458_v57, 1  ;;  %v298_v32 = vld [vmem:[%s2861_s18 + $0xa8] sm:$0xff] }
  0x7d   : > { %763 = vrot.lane.b32.xlu1 %v728_v7, %s2743_s21  ;;  %v732_v46 = vrot.slane %v373_v43, 1  ;;  %v820_v59 = vrot.slane %v373_v43, 2 }
  0x7f   : > { %v733_v55 = vsel %vm481_vm1, %v731_v44, %v732_v46  ;;  %v821_v5 = vsel %vm564_vm2, %v819_v58, %v820_v59  ;;  %v735_v8 = vsel %vm481_vm1, %v732_v46, %v734_v62 }
  0x80   : > { %533 = vrot.lane.b32.xlu0 %v501_v11, %s2740_s13 }
  0x81   : > { %1003 = vrot.lane.b32.xlu1 %v579_v51, %s2747_s8 }
  0x82   : > { %v3037_v23 = vpop.permute.xlu0 %519 }
  0x84   : > { %851 = vrot.lane.b32.xlu0 %v816_v15, %s2744_s22  ;;  %v588_v15 = vrot.slane %v3069_v47, 2 }
  0x85   : > { %765 = vrot.lane.b32.xlu1 %v730_v17, %s2743_s21  ;;  %v1044_v17 = vsel %vm1043_vm6, 0.0, %v3037_v23 }
  0x86   : > { %v3045_v28 = vpop.permute.xlu0 %602  ;;  %v3121_v22 = vsel %vm564_vm2, %v587_v13, %v588_v15  ;;  %v3130_v23 = vsel %vm564_vm2, %v588_v15, %v590_v20 }
  0x88   : > { %535 = vrot.lane.b32.xlu0 %v503_v19, %s2740_s13 }
  0x89   : > { %1005 = vrot.lane.b32.xlu1 %v581_v53, %s2747_s8  ;;  %v505_v53 = vrot.slane %v3069_v47, 1 }
  0x8b   : > { %v3087_v60 = vsel %vm481_vm1, %v504_v52, %v505_v53  ;;  %v3104_v10 = vsel %vm481_vm1, %v505_v53, %v507_v6 }
  0x8c   : > { %853 = vrot.lane.b32.xlu0 %v818_v24, %s2744_s22 }
  0x8d   : > { %616 = vrot.lane.b32.xlu1 %v584_v26, %s2741_s19 }
  0x8f   : > { %v3050_v34 = vpop.permute.xlu1 %655 }
  0x90   : > { %618 = vrot.lane.b32.xlu0 %v586_v31, %s2741_s19 }
  0x91   : > { %900 = vrot.lane.b32.xlu1 %v3016_v4, %s2745_s23 }
  0x92   : > { %v3057_v38 = vpop.permute.xlu0 %751 }
  0x93   : > { %v3060_v42 = vpop.permute.xlu1 %657 }
  0x94   : > { %902 = vrot.lane.b32.xlu0 %v3013_v3, %s2745_s23 }
  0x95   : > { %671 = vrot.lane.b32.xlu1 %v442_v39, %s4058_s20 }
  0x96   : > { %v3066_v45 = vpop.permute.xlu0 %753 }
  0x97   : > { %v3074_v51 = vpop.permute.xlu1 %521 }
  0x98   : > { %673 = vrot.lane.b32.xlu0 %v373_v43, %s4058_s20 }
  0x99   : > { %954 = vrot.lane.b32.xlu1 %v501_v11, %s4059_s29  ;;  %v822_v11 = vrot.slane %v458_v57, 2 }
  0x9a   : > { %v3080_v54 = vpop.permute.xlu0 %523 }
  0x9b   : > { %v840_v56 = vpop.permute.xlu1 %839 }
  0x9c   : > { %956 = vrot.lane.b32.xlu0 %v503_v19, %s4059_s29  ;;  %v823_v19 = vsel %vm564_vm2, %v820_v59, %v822_v11 }
  0x9d   : > { %767 = vrot.lane.b32.xlu1 %v733_v55, %s2743_s21 }
  0x9e   : > { %v3089_v61 = vpop.permute.xlu0 %841 }
  0x9f   : > { %v3092_v0 = vpop.permute.xlu1 %604 }
  0xa0   : > { %537 = vrot.lane.b32.xlu0 %v3087_v60, %s2740_s13 }
  0xa1   : > { %1007 = vrot.lane.b32.xlu1 %v584_v26, %s2747_s8  ;;  %v1060_v26 = vsel %vm1059_vm7, %v1044_v17, %v3045_v28  ;;  %v299_v28 = vld [vmem:[%s2861_s18 + $0xb0] sm:$0xff] }
  0xa2   : > { %v3098_v7 = vpop.permute.xlu0 %606  ;;  %v1076_v33 = vsel %vm1075_vm8, %v1060_v26, %v3050_v34  ;;  %v378_v34 = vrot.slane %v298_v32, 7  ;;  %v380_v44 = vrot.slane %v299_v28, 7  ;;  %v1077_v63 = vsel %vm1075_vm8, %v1060_v26, %v3060_v42 }
  0xa3   : > { %v889_v9 = vpop.permute.xlu1 %888  ;;  %v1093_v37 = vsel %vm1092_vm9, %v1076_v33, %v3057_v38  ;;  %v381_v38 = vrot.slane %v300_v36, 7  ;;  %v1094_v6 = vsel %vm1092_vm9, %v1077_v63, %v3066_v45 }
  0xa4   : > { %855 = vrot.lane.b32.xlu0 %v821_v5, %s2744_s22  ;;  %v1110_v39 = vsel %vm1109_vm10, %v1093_v37, %v840_v56  ;;  %v3163_v62 = vsel %vm346_vm0, 0.0, %v380_v44 }
  0xa5   : > { %769 = vrot.lane.b32.xlu1 %v735_v8, %s2743_s21  ;;  %v1127_v40 = vsel %vm1126_vm11, %v1110_v39, %v889_v9  ;;  %v3160_v59 = vsel %vm346_vm0, %v380_v44, %v381_v38  ;;  %v1111_v8 = vsel %vm1109_vm10, %v1094_v6, %v3089_v61  ;;  %v509_v9 = vrot.slane %v3163_v62, 1  ;;  %v302_v6 = vld [vmem:[%s2861_s18 + $0xc8] sm:$0xff] }
  0xa6   : > { %v3106_v12 = vpop.permute.xlu0 %890  ;;  %v510_v11 = vrot.slane %v3160_v59, 1  ;;  %v461_v26 = vsel %vm346_vm0, %v381_v38, 0.0 }
  0xa7   : > { %v3110_v16 = vpop.permute.xlu1 %659  ;;  %v1128_v42 = vsel %vm1126_vm11, %v1111_v8, %v3106_v12  ;;  %v595_v44 = vrot.slane %v461_v26, 2 }
  0xa8   : > { %539 = vrot.lane.b32.xlu0 %v3104_v10, %s2740_s13  ;;  %v3191_v12 = vsel %vm481_vm1, %v509_v9, %v510_v11 }
  0xa9   : > { %1009 = vrot.lane.b32.xlu1 %v586_v31, %s2747_s8  ;;  %v377_v31 = vrot.slane %v297_v25, 7 }
  0xaa   : > { %v3118_v21 = vpop.permute.xlu0 %661 }
  0xab   : > { %v943_v24 = vpop.permute.xlu1 %942  ;;  %v444_v43 = vsel %vm346_vm0, 0.0, %v377_v31  ;;  %v379_v55 = vsel %vm346_vm0, %v377_v31, %v378_v34  ;;  %v512_v31 = vrot.slane %v461_v26, 1 }
  0xac   : > { %857 = vrot.lane.b32.xlu0 %v823_v19, %s2744_s22  ;;  %v1144_v46 = vsel %vm1143_vm12, %v1127_v40, %v943_v24  ;;  %v736_v56 = vrot.slane %v444_v43, 1  ;;  %v737_v58 = vrot.slane %v379_v55, 1  ;;  %v460_v19 = vsel %vm346_vm0, %v378_v34, 0.0 }
  0xad   : > { %620 = vrot.lane.b32.xlu1 %v3121_v22, %s2741_s19  ;;  %v825_v20 = vrot.slane %v379_v55, 2  ;;  %v739_v25 = vrot.slane %v460_v19, 1  ;;  %v3209_v36 = vsel %vm481_vm1, %v510_v11, %v512_v31  ;;  %v827_v37 = vrot.slane %v460_v19, 2  ;;  %v303_v11 = vld [vmem:[%s2861_s18 + $0xd0] sm:$0xff] }
  0xae   : > { %v945_v27 = vpop.permute.xlu0 %944  ;;  %v738_v15 = vsel %vm481_vm1, %v736_v56, %v737_v58  ;;  %v593_v34 = vrot.slane %v3160_v59, 2 }
  0xaf   : > { %v3135_v35 = vpop.permute.xlu1 %755  ;;  %v1145_v45 = vsel %vm1143_vm12, %v1128_v42, %v945_v27  ;;  %v740_v33 = vsel %vm481_vm1, %v737_v58, %v739_v25  ;;  %v304_v42 = vld [vmem:[%s2861_s18 + $0xd8] sm:$0xff] }
  0xb0   : > { %622 = vrot.lane.b32.xlu0 %v3130_v23, %s2741_s19  ;;  %v387_v19 = vrot.slane %v304_v42, 7 }
  0xb1   : > { %904 = vrot.lane.b32.xlu1 %v3072_v48, %s2745_s23 }
  0xb2   : > { %v3147_v41 = vpop.permute.xlu0 %525 }
  0xb3   : > { %v996_v52 = vpop.permute.xlu1 %995 }
  0xb4   : > { %906 = vrot.lane.b32.xlu0 %v3069_v47, %s2745_s23  ;;  %v1161_v53 = vsel %vm1160_vm13, %v1144_v46, %v996_v52 }
  0xb5   : > { %675 = vrot.lane.b32.xlu1 %v444_v43, %s4058_s20  ;;  %2462 = vmatprep.mubr.msk.f32.mxu1 %vm1183_vm14, %v1161_v53  ;;  %v301_v53 = vld [vmem:[%s2861_s18 + $0xc0] sm:$0xff] }
  0xb6   : > { %v3157_v57 = vpop.permute.xlu0 %843  ;;  %v383_v63 = vrot.slane %v301_v53, 7 }
  0xb7   : > { %v3167_v5 = vpop.permute.xlu1 %757 }
  0xb8   : > { %677 = vrot.lane.b32.xlu0 %v379_v55, %s4058_s20  ;;  %v1045_v55 = vsel %vm1043_vm6, %v2873_v14, %v3074_v51 }
  0xb9   : > { %958 = vrot.lane.b32.xlu1 %v3087_v60, %s4059_s29  ;;  %v824_v60 = vrot.slane %v444_v43, 2  ;;  %v828_v43 = vsel %vm564_vm2, %v825_v20, %v827_v37  ;;  %v1061_v56 = vsel %vm1059_vm7, %v1045_v55, %v3092_v0  ;;  %v384_v0 = vrot.slane %v302_v6, 7 }
  0xba   : > { %v3180_v13 = vpop.permute.xlu0 %527  ;;  %v1078_v8 = vsel %vm1075_vm8, %v1061_v56, %v3110_v16 }
  0xbb   : > { %v998_v17 = vpop.permute.xlu1 %997  ;;  %v1095_v14 = vsel %vm1092_vm9, %v1078_v8, %v3135_v35  ;;  %v385_v25 = vsel %vm346_vm0, %v383_v63, %v384_v0 }
  0xbc   : > { %v1162_v61 = vsel %vm1160_vm13, %v1145_v45, %v998_v17  ;;  %960 = vrot.lane.b32.xlu0 %v3104_v10, %s4059_s29  ;;  %v826_v10 = vsel %vm564_vm2, %v824_v60, %v825_v20  ;;  %v1112_v51 = vsel %vm1109_vm10, %v1095_v14, %v3157_v57  ;;  %v446_v45 = vsel %vm346_vm0, 0.0, %v383_v63 }
  0xbd   : > { %771 = vrot.lane.b32.xlu1 %v738_v15, %s2743_s21  ;;  %2463 = vmatmul.mubr.msk.f32.vlgmr.msra.gmra.mrb[0].mxu1 %vm1183_vm14, %v1162_v61  ;;  %v386_v17 = vrot.slane %v303_v11, 7  ;;  %v1046_v57 = vsel %vm1043_vm6, %v2877_v18, %v3080_v54  ;;  %v741_v20 = vrot.slane %v446_v45, 1  ;;  %v742_v31 = vrot.slane %v385_v25, 1 }
  0xbe   : > { %v3193_v24 = vpop.permute.xlu0 %845  ;;  %v1062_v26 = vsel %vm1059_vm7, %v1046_v57, %v3098_v7  ;;  %v830_v55 = vrot.slane %v385_v25, 2  ;;  %v463_v63 = vsel %vm346_vm0, %v387_v19, 0.0 }
  0xbf   : > { %v3196_v27 = vpop.permute.xlu1 %608  ;;  %v1079_v18 = vsel %vm1075_vm8, %v1062_v26, %v3118_v21  ;;  %v517_v8 = vrot.slane %v463_v63, 1 }
  0xc0   : > { %541 = vrot.lane.b32.xlu0 %v3191_v12, %s2740_s13  ;;  %v1096_v37 = vsel %vm1092_vm9, %v1079_v18, %v3167_v5 }
  0xc1   : > { %1011 = vrot.lane.b32.xlu1 %v3121_v22, %s2747_s8  ;;  %v592_v22 = vrot.slane %v3163_v62, 2  ;;  %v1113_v7 = vsel %vm1109_vm10, %v1096_v37, %v3193_v24  ;;  %v306_v37 = vld [vmem:[%s2861_s18 + $0xe8] sm:$0xff] }
  0xc2   : > { %v3203_v32 = vpop.permute.xlu0 %610 }
  0xc3   : > { %v893_v28 = vpop.permute.xlu1 %892  ;;  %v3223_v46 = vsel %vm564_vm2, %v592_v22, %v593_v34 }
  0xc4   : > { %859 = vrot.lane.b32.xlu0 %v826_v10, %s2744_s22  ;;  %v1129_v15 = vsel %vm1126_vm11, %v1112_v51, %v893_v28  ;;  %v3274_v28 = vsel %vm346_vm0, 0.0, %v386_v17 }
  0xc5   : > { %773 = vrot.lane.b32.xlu1 %v740_v33, %s2743_s21  ;;  %v3271_v33 = vsel %vm346_vm0, %v386_v17, %v387_v19  ;;  %v514_v22 = vrot.slane %v3274_v28, 1 }
  0xc6   : > { %v895_v39 = vpop.permute.xlu0 %894 }
  0xc7   : > { %v3213_v40 = vpop.permute.xlu1 %663 }
  0xc8   : > { %543 = vrot.lane.b32.xlu0 %v3209_v36, %s2740_s13 }
  0xc9   : > { %1013 = vrot.lane.b32.xlu1 %v3130_v23, %s2747_s8  ;;  %v3233_v23 = vsel %vm564_vm2, %v593_v34, %v595_v44  ;;  %v515_v34 = vrot.slane %v3271_v33, 1  ;;  %v743_v44 = vsel %vm481_vm1, %v741_v20, %v742_v31  ;;  %v305_v20 = vld [vmem:[%s2861_s18 + $0xe0] sm:$0xff] }
  0xca   : > { %v3220_v38 = vpop.permute.xlu0 %665  ;;  %v389_v18 = vrot.slane %v305_v20, 7 }
  0xcb   : > { %v947_v52 = vpop.permute.xlu1 %946  ;;  %v518_v51 = vsel %vm481_vm1, %v515_v34, %v517_v8 }
  0xcc   : > { %861 = vrot.lane.b32.xlu0 %v828_v43, %s2744_s22  ;;  %v1146_v35 = vsel %vm1143_vm12, %v1129_v15, %v947_v52  ;;  %v1130_v43 = vsel %vm1126_vm11, %v1113_v7, %v895_v39  ;;  %v462_v52 = vsel %vm346_vm0, %v384_v0, 0.0  ;;  %v3301_v39 = vsel %vm481_vm1, %v514_v22, %v515_v34 }
  0xcd   : > { %624 = vrot.lane.b32.xlu1 %v3223_v46, %s2741_s19  ;;  %v832_v0 = vrot.slane %v462_v52, 2 }
  0xce   : > { %v949_v58 = vpop.permute.xlu0 %948 }
  0xcf   : > { %v3240_v9 = vpop.permute.xlu1 %759  ;;  %v1147_v5 = vsel %vm1143_vm12, %v1130_v43, %v949_v58  ;;  %v744_v58 = vrot.slane %v462_v52, 1  ;;  %v833_v19 = vsel %vm564_vm2, %v830_v55, %v832_v0 }
  0xd0   : > { %626 = vrot.lane.b32.xlu0 %v3233_v23, %s2741_s19 }
  0xd1   : > { %908 = vrot.lane.b32.xlu1 %v3163_v62, %s2745_s23  ;;  %v745_v42 = vsel %vm481_vm1, %v742_v31, %v744_v58 }
  0xd2   : > { %v3253_v16 = vpop.permute.xlu0 %529 }
  0xd3   : > { %v1000_v61 = vpop.permute.xlu1 %999 }
  0xd4   : > { %v1163_v60 = vsel %vm1160_vm13, %v1146_v35, %v1000_v61  ;;  %910 = vrot.lane.b32.xlu0 %v3160_v59, %s2745_s23  ;;  %v600_v35 = vrot.slane %v463_v63, 2 }
  0xd5   : > { %679 = vrot.lane.b32.xlu1 %v446_v45, %s4058_s20  ;;  %2465 = vmatprep.mubr.msk.f32.mxu1 %vm1183_vm14, %v1163_v60 }
  0xd6   : > { %v3268_v10 = vpop.permute.xlu0 %847 }
  0xd7   : > { %v3278_v54 = vpop.permute.xlu1 %761 }
  0xd8   : > { %681 = vrot.lane.b32.xlu0 %v385_v25, %s4058_s20  ;;  %v1047_v25 = vsel %vm1043_vm6, %v2916_v50, %v3147_v41  ;;  %v390_v41 = vrot.slane %v306_v37, 7 }
  0xd9   : > { %962 = vrot.lane.b32.xlu1 %v3191_v12, %s4059_s29  ;;  %v829_v12 = vrot.slane %v446_v45, 2  ;;  %v597_v45 = vrot.slane %v3274_v28, 2 }
  0xda   : > { %v3290_v21 = vpop.permute.xlu0 %531  ;;  %v391_v52 = vsel %vm346_vm0, %v389_v18, %v390_v41  ;;  %v464_v58 = vsel %vm346_vm0, %v390_v41, 0.0 }
  0xdb   : > { %v1002_v53 = vpop.permute.xlu1 %1001 }
  0xdc   : > { %v1164_v24 = vsel %vm1160_vm13, %v1147_v5, %v1002_v53  ;;  %964 = vrot.lane.b32.xlu0 %v3209_v36, %s4059_s29  ;;  %v831_v36 = vsel %vm564_vm2, %v829_v12, %v830_v55  ;;  %v747_v55 = vrot.slane %v391_v52, 1 }
  0xdd   : > { %775 = vrot.lane.b32.xlu1 %v743_v44, %s2743_s21  ;;  %2466 = vmatmul.mubr.msk.f32.gmra.mrb[2].mxu1 %vm1183_vm14, %v1164_v24 }
  0xde   : > { %v3303_v56 = vpop.permute.xlu0 %849 }
  0xdf   : > { %v3306_v6 = vpop.permute.xlu1 %612 }
  0xe0   : > { %545 = vrot.lane.b32.xlu0 %v3301_v39, %s2740_s13 }
  0xe1   : > { %1015 = vrot.lane.b32.xlu1 %v3223_v46, %s2747_s8  ;;  %v598_v46 = vrot.slane %v3271_v33, 2 }
  0xe2   : > { %v3313_v11 = vpop.permute.xlu0 %614 }
  0xe3   : > { %v897_v14 = vpop.permute.xlu1 %896  ;;  %v599_v60 = vsel %vm564_vm2, %v597_v45, %v598_v46  ;;  %v601_v26 = vsel %vm564_vm2, %v598_v46, %v600_v35  ;;  %v307_v45 = vld [vmem:[%s2861_s18 + $0xf0] sm:$0xff] }
  0xe4   : > { %863 = vrot.lane.b32.xlu0 %v831_v36, %s2744_s22  ;;  %v749_v36 = vrot.slane %v464_v58, 1  ;;  %v392_v35 = vrot.slane %v307_v45, 7 }
  0xe5   : > { %777 = vrot.lane.b32.xlu1 %v745_v42, %s2743_s21 }
  0xe6   : > { %v899_v15 = vpop.permute.xlu0 %898 }
  0xe7   : > { %v3321_v17 = vpop.permute.xlu1 %667 }
  0xe8   : > { %547 = vrot.lane.b32.xlu0 %v518_v51, %s2740_s13  ;;  %s4055_s13 = smov 8  }
  0xe9   : > { %1017 = vrot.lane.b32.xlu1 %v3233_v23, %s2747_s8  ;;  %v1063_v23 = vsel %vm1059_vm7, %v1047_v25, %v3196_v27 }
  0xea   : > { %v3327_v61 = vpop.permute.xlu0 %669  ;;  %v1080_v7 = vsel %vm1075_vm8, %v1063_v23, %v3213_v40  ;;  %v448_v40 = vsel %vm346_vm0, 0.0, %v389_v18  ;;  %v837_v18 = vrot.slane %v464_v58, 2 }
  0xeb   : > { %v951_v57 = vpop.permute.xlu1 %950  ;;  %v1097_v34 = vsel %vm1092_vm9, %v1080_v7, %v3240_v9  ;;  %v746_v24 = vrot.slane %v448_v40, 1 }
  0xec   : > { %865 = vrot.lane.b32.xlu0 %v833_v19, %s2744_s22  ;;  %v1114_v50 = vsel %vm1109_vm10, %v1097_v34, %v3268_v10  ;;  %v1048_v10 = vsel %vm1043_vm6, %v2913_v49, %v3180_v13 }
  0xed   : > { %628 = vrot.lane.b32.xlu1 %v599_v60, %s2741_s19  ;;  %v1131_v27 = vsel %vm1126_vm11, %v1114_v50, %v897_v14  ;;  %v1064_v53 = vsel %vm1059_vm7, %v1048_v10, %v3203_v32 }
  0xee   : > { %v953_v31 = vpop.permute.xlu0 %952  ;;  %v1148_v44 = vsel %vm1143_vm12, %v1131_v27, %v951_v57  ;;  %v1081_v49 = vsel %vm1075_vm8, %v1064_v53, %v3220_v38  ;;  %v748_v38 = vsel %vm481_vm1, %v746_v24, %v747_v55 }
  0xef   : > { %v3342_v22 = vpop.permute.xlu1 %763  ;;  %v1098_v63 = vsel %vm1092_vm9, %v1081_v49, %v3278_v54  ;;  %v308_v54 = vld [vmem:[%s2861_s18 + $0xf8] sm:$0xff]  ;;  %s2750_s18 = smov 16  }
  0xf0   : > { %630 = vrot.lane.b32.xlu0 %v601_v26, %s2741_s19  ;;  %v1115_v32 = vsel %vm1109_vm10, %v1098_v63, %v3303_v56  ;;  %v834_v56 = vrot.slane %v448_v40, 2  ;;  %v393_v57 = vrot.slane %v308_v54, 7  ;;  %s2759_s19 = smov 112  }
  0xf1   : > { %912 = vrot.lane.b32.xlu1 %v3274_v28, %s2745_s23  ;;  %v1132_v8 = vsel %vm1126_vm11, %v1115_v32, %v899_v15  ;;  %v835_v15 = vrot.slane %v391_v52, 2 }
  0xf2   : > { %v3352_v43 = vpop.permute.xlu0 %533  ;;  %v1149_v14 = vsel %vm1143_vm12, %v1132_v8, %v953_v31  ;;  %v394_v23 = vsel %vm346_vm0, %v392_v35, %v393_v57  ;;  %v449_v31 = vsel %vm346_vm0, 0.0, %v392_v35  ;;  %v465_v27 = vsel %vm346_vm0, %v393_v57, 0.0 }
  0xf3   : > { %v1004_v5 = vpop.permute.xlu1 %1003  ;;  %v937_v7 = vrot.slane %v449_v31, 1  ;;  %v938_v34 = vrot.slane %v394_v23, 1  ;;  %v838_v41 = vsel %vm564_vm2, %v835_v15, %v837_v18  ;;  %v993_v49 = vrot.slane %v465_v27, 2 }
  0xf4   : > { %v1165_v9 = vsel %vm1160_vm13, %v1148_v44, %v1004_v5  ;;  %914 = vrot.lane.b32.xlu0 %v3271_v33, %s2745_s23  ;;  %v991_v5 = vrot.slane %v394_v23, 2  ;;  %v1051_v18 = vsel %vm1043_vm6, %v3016_v4, %v3352_v43 }
  0xf5   : > { %683 = vrot.lane.b32.xlu1 %v448_v40, %s4058_s20  ;;  %2468 = vmatprep.mubr.msk.f32.mxu1 %vm1183_vm14, %v1165_v9  ;;  %v990_v40 = vrot.slane %v449_v31, 2  ;;  %v939_v44 = vsel %vm481_vm1, %v937_v7, %v938_v34 }
  0xf6   : > { %v3367_v12 = vpop.permute.xlu0 %851  ;;  %v994_v8 = vsel %vm564_vm2, %v991_v5, %v993_v49 }
  0xf7   : > { %v3372_v13 = vpop.permute.xlu1 %765  ;;  %v992_v53 = vsel %vm564_vm2, %v990_v40, %v991_v5 }
  0xf8   : > { %685 = vrot.lane.b32.xlu0 %v391_v52, %s4058_s20  ;;  %v1049_v52 = vsel %vm1043_vm6, %v2972_v30, %v3253_v16 }
  0xf9   : > { %966 = vrot.lane.b32.xlu1 %v3301_v39, %s4059_s29  ;;  %v750_v39 = vsel %vm481_vm1, %v747_v55, %v749_v36  ;;  %v1065_v24 = vsel %vm1059_vm7, %v1049_v52, %v3306_v6 }
  0xfa   : > { %v3382_v42 = vpop.permute.xlu0 %535  ;;  %v1082_v63 = vsel %vm1075_vm8, %v1065_v24, %v3321_v17 }
  0xfb   : > { %v1006_v0 = vpop.permute.xlu1 %1005  ;;  %v1099_v36 = vsel %vm1092_vm9, %v1082_v63, %v3342_v22  ;;  %v1050_v22 = vsel %vm1043_vm6, %v2969_v29, %v3290_v21  ;;  %v1052_v4 = vsel %vm1043_vm6, %v3013_v3, %v3382_v42 }
  0xfc   : > { %v1166_v46 = vsel %vm1160_vm13, %v1149_v14, %v1006_v0  ;;  %968 = vrot.lane.b32.xlu0 %v518_v51, %s4059_s29  ;;  %v836_v51 = vsel %vm564_vm2, %v834_v56, %v835_v15  ;;  %v1116_v30 = vsel %vm1109_vm10, %v1099_v36, %v3367_v12  ;;  %v1066_v12 = vsel %vm1059_vm7, %v1050_v22, %v3313_v11 }
  0xfd   : > { %779 = vrot.lane.b32.xlu1 %v748_v38, %s2743_s21  ;;  %2469 = vmatmul.mubr.msk.f32.gmra.mrb[4].mxu1 %vm1183_vm14, %v1166_v46  ;;  %v1083_v45 = vsel %vm1075_vm8, %v1066_v12, %v3327_v61 }
  0xfe   : > { %v854_v19 = vpop.permute.xlu0 %853  ;;  %v1100_v46 = vsel %vm1092_vm9, %v1083_v45, %v3372_v13 }
  0xff   : > { %v3393_v20 = vpop.permute.xlu1 %616  ;;  %v1117_v29 = vsel %vm1109_vm10, %v1100_v46, %v854_v19 }
 0x100   : > { %781 = vrot.lane.b32.xlu0 %v750_v39, %s2743_s21 }
 0x101   : > { %1019 = vrot.lane.b32.xlu1 %v599_v60, %s2747_s8 }
 0x102   : > { %v3397_v25 = vpop.permute.xlu0 %618 }
 0x103   : > { %v901_v37 = vpop.permute.xlu1 %900  ;;  %v1068_v43 = vsel %vm1059_vm7, %v1052_v4, %v3397_v25 }
 0x104   : > { %1021 = vrot.lane.b32.xlu0 %v601_v26, %s2747_s8  ;;  %v940_v26 = vrot.slane %v465_v27, 1  ;;  %v1133_v16 = vsel %vm1126_vm11, %v1116_v30, %v901_v37  ;;  %v1067_v37 = vsel %vm1059_vm7, %v1051_v18, %v3393_v20 }
 0x105   : > { %867 = vrot.lane.b32.xlu1 %v836_v51, %s2744_s22 }
 0x106   : > { %v903_v50 = vpop.permute.xlu0 %902  ;;  %v941_v58 = vsel %vm481_vm1, %v938_v34, %v940_v26 }
 0x107   : > { %v672_v60 = vpop.permute.xlu1 %671  ;;  %v1134_v21 = vsel %vm1126_vm11, %v1117_v29, %v903_v50 }
 0x108   : > { %916 = vrot.lane.b32.xlu0 %v449_v31, %s2745_s23  ;;  %v1084_v34 = vsel %vm1075_vm8, %v1067_v37, %v672_v60 }
 0x109   : > { %869 = vrot.lane.b32.xlu1 %v838_v41, %s2744_s22  ;;  %s2751_s22 = smov 40  }
 0x10a   : > { %v3409_v9 = vpop.permute.xlu0 %673 }
 0x10b   : > { %v955_v10 = vpop.permute.xlu1 %954  ;;  %v1085_v60 = vsel %vm1075_vm8, %v1068_v43, %v3409_v9 }
 0x10c   : > { %970 = vrot.lane.b32.xlu0 %v939_v44, %s4059_s29  ;;  %v1150_v38 = vsel %vm1143_vm12, %v1133_v16, %v955_v10 }
 0x10d   : > { %918 = vrot.lane.b32.xlu1 %v394_v23, %s2745_s23  ;;  %s2752_s23 = smov 32  }
 0x10e   : > { %v957_v55 = vpop.permute.xlu0 %956 }
 0x10f   : > { %v768_v32 = vpop.permute.xlu1 %767  ;;  %v1151_v39 = vsel %vm1143_vm12, %v1134_v21, %v957_v55 }
 0x110   : > { %1023 = vrot.lane.b32.xlu0 %v992_v53, %s2747_s8  ;;  %v1101_v41 = vsel %vm1092_vm9, %v1084_v34, %v768_v32 }
 0x111   : > { %972 = vrot.lane.b32.xlu1 %v941_v58, %s4059_s29  ;;  %s2758_s29 = smov 96  }
 0x112   : > { %v3429_v6 = vpop.permute.xlu0 %537 }
 0x113   : > { %v1008_v17 = vpop.permute.xlu1 %1007 }
 0x114   : > { %v1167_v14 = vsel %vm1160_vm13, %v1150_v38, %v1008_v17  ;;  %1503 = vrot.lane.b32.xlu0 %v2850_v1, %s4055_s13  ;;  %v1053_v38 = vsel %vm1043_vm6, %v3072_v48, %v3429_v6 }
 0x115   : > { %1025 = vrot.lane.b32.xlu1 %v994_v8, %s2747_s8  ;;  %2471 = vmatprep.mubr.msk.f32.mxu1 %vm1183_vm14, %v1167_v14 }
 0x116   : > { %v856_v0 = vpop.permute.xlu0 %855 }
 0x117   : > { %v770_v54 = vpop.permute.xlu1 %769  ;;  %v1118_v27 = vsel %vm1109_vm10, %v1101_v41, %v856_v0 }
 0x118   : > { %v1102_v53 = vsel %vm1092_vm9, %v1085_v60, %v770_v54 }
 0x119   : > { %1539 = vrot.lane.b32.xlu1 %v2855_v2, %s2750_s18 }
 0x11a   : > { %v540_v11 = vpop.permute.xlu0 %539 }
 0x11b   : > { %v1010_v56 = vpop.permute.xlu1 %1009  ;;  %v1054_v48 = vsel %vm1043_vm6, %v3069_v47, %v540_v11 }
 0x11c   : > { %v1168_v15 = vsel %vm1160_vm13, %v1151_v39, %v1010_v56 }
 0x11d   : > { %2472 = vmatmul.mubr.msk.f32.gmra.mrb[6].mxu1 %vm1183_vm14, %v1168_v15 }
 0x11e   : > { %v858_v61 = vpop.permute.xlu0 %857 }
 0x11f   : > { %v621_v35 = vpop.permute.xlu1 %620  ;;  %v1119_v24 = vsel %vm1109_vm10, %v1102_v53, %v858_v61 }
 0x120   : > { %v1069_v17 = vsel %vm1059_vm7, %v1053_v38, %v621_v35 }
 0x122   : > { %v623_v57 = vpop.permute.xlu0 %622 }
 0x123   : > { %v905_v13 = vpop.permute.xlu1 %904  ;;  %v1070_v6 = vsel %vm1059_vm7, %v1054_v48, %v623_v57 }
 0x124   : > { %v1135_v40 = vsel %vm1126_vm11, %v1118_v27, %v905_v13 }
 0x126   : > { %v907_v51 = vpop.permute.xlu0 %906 }
 0x127   : > { %v676_v19 = vpop.permute.xlu1 %675  ;;  %v1136_v55 = vsel %vm1126_vm11, %v1119_v24, %v907_v51 }
 0x128   : > { %v1086_v22 = vsel %vm1075_vm8, %v1069_v17, %v676_v19 }
 0x12a   : > { %v678_v23 = vpop.permute.xlu0 %677 }
 0x12b   : > { %v959_v31 = vpop.permute.xlu1 %958  ;;  %v1087_v15 = vsel %vm1075_vm8, %v1070_v6, %v678_v23 }
 0x12c   : > { %v1152_v5 = vsel %vm1143_vm12, %v1135_v40, %v959_v31 }
 0x12e   : > { %v961_v7 = vpop.permute.xlu0 %960 }
 0x12f   : > { %v772_v50 = vpop.permute.xlu1 %771  ;;  %v1153_v49 = vsel %vm1143_vm12, %v1136_v55, %v961_v7 }
 0x130   : > { %v1103_v0 = vsel %vm1092_vm9, %v1086_v22, %v772_v50 }
 0x132   : > { %v542_v44 = vpop.permute.xlu0 %541 }
 0x133   : > { %v1012_v26 = vpop.permute.xlu1 %1011  ;;  %v1055_v27 = vsel %vm1043_vm6, %v3163_v62, %v542_v44 }
 0x134   : > { %v1169_v10 = vsel %vm1160_vm13, %v1152_v5, %v1012_v26 }
 0x135   : > { %2474 = vmatprep.mubr.msk.f32.mxu1 %vm1183_vm14, %v1169_v10 }
 0x136   : > { %v860_v20 = vpop.permute.xlu0 %859 }
 0x137   : > { %v774_v52 = vpop.permute.xlu1 %773  ;;  %v1120_v45 = vsel %vm1109_vm10, %v1103_v0, %v860_v20 }
 0x138   : > { %v1104_v35 = vsel %vm1092_vm9, %v1087_v15, %v774_v52  ;;  %v3543_v15 = vld [vmem:[%s4045_s2] ss:$0 sm:$0xff] }
 0x13a   : > { %v544_v58 = vpop.permute.xlu0 %543 }
 0x13b   : > { %v1014_v3 = vpop.permute.xlu1 %1013  ;;  %v1056_v4 = vsel %vm1043_vm6, %v3160_v59, %v544_v58 }
 0x13c   : > { %v1170_v42 = vsel %vm1160_vm13, %v1153_v49, %v1014_v3 }
 0x13d   : > { %2475 = vmatmul.mubr.msk.f32.gmra.mrb[8].mxu1 %vm1183_vm14, %v1170_v42 }
 0x13e   : > { %v862_v25 = vpop.permute.xlu0 %861 }
 0x13f   : > { %v625_v63 = vpop.permute.xlu1 %624  ;;  %v1121_v13 = vsel %vm1109_vm10, %v1104_v35, %v862_v25 }
 0x140   : > { %v1071_v40 = vsel %vm1059_vm7, %v1055_v27, %v625_v63 }
 0x142   : > { %v627_v32 = vpop.permute.xlu0 %626 }
 0x143   : > { %v909_v36 = vpop.permute.xlu1 %908  ;;  %v1072_v20 = vsel %vm1059_vm7, %v1056_v4, %v627_v32  ;;  %v1397_v4 = vld [vmem:[%s4046_s3] sm:$0xff] }
 0x144   : > { %v1137_v54 = vsel %vm1126_vm11, %v1120_v45, %v909_v36 }
 0x146   : > { %v911_v9 = vpop.permute.xlu0 %910 }
 0x147   : > { %v680_v30 = vpop.permute.xlu1 %679  ;;  %v1138_v51 = vsel %vm1126_vm11, %v1121_v13, %v911_v9 }
 0x148   : > { %v1088_v26 = vsel %vm1075_vm8, %v1071_v40, %v680_v30 }
 0x14a   : > { %v682_v16 = vpop.permute.xlu0 %681 }
 0x14b   : > { %v963_v8 = vpop.permute.xlu1 %962  ;;  %v1089_v52 = vsel %vm1075_vm8, %v1072_v20, %v682_v16 }
 0x14c   : > { %v1154_v29 = vsel %vm1143_vm12, %v1137_v54, %v963_v8 }
 0x14e   : > { %v965_v14 = vpop.permute.xlu0 %964 }
 0x14f   : > { %v776_v12 = vpop.permute.xlu1 %775  ;;  %v1155_v31 = vsel %vm1143_vm12, %v1138_v51, %v965_v14 }
 0x150   : > { %v1105_v43 = vsel %vm1092_vm9, %v1088_v26, %v776_v12 }
 0x152   : > { %v546_v46 = vpop.permute.xlu0 %545 }
 0x153   : > { %v1016_v21 = vpop.permute.xlu1 %1015  ;;  %v1057_v9 = vsel %vm1043_vm6, %v3274_v28, %v546_v46 }
 0x154   : > { %v1171_v39 = vsel %vm1160_vm13, %v1154_v29, %v1016_v21 }
 0x155   : > { %2477 = vmatprep.mubr.msk.f32.mxu1 %vm1183_vm14, %v1171_v39 }
 0x156   : > { %v864_v56 = vpop.permute.xlu0 %863 }
 0x157   : > { %v778_v61 = vpop.permute.xlu1 %777  ;;  %v1122_v60 = vsel %vm1109_vm10, %v1105_v43, %v864_v56  ;;  %v1398_v43 = vld [vmem:[%s4046_s3 + $0x8] sm:$0xff] }
 0x158   : > { %v1106_v44 = vsel %vm1092_vm9, %v1089_v52, %v778_v61  ;;  %v2526_v20 = vpack.c.bf16 %v1398_v43, %v1397_v4 }
 0x15a   : > { %v548_v19 = vpop.permute.xlu0 %547  ;;  %2527 = vmatprep.subr.bf16.mxu1 %v2526_v20 }
 0x15b   : > { %v1018_v18 = vpop.permute.xlu1 %1017  ;;  %v1058_v22 = vsel %vm1043_vm6, %v3271_v33, %v548_v19  ;;  %2529 = vmatpush3.bf16.msra.mxu1 %v2526_v20  ;;  %vm1806_vm6 = vcmask 392192  }
 0x15c   : > { %v1172_v47 = vsel %vm1160_vm13, %v1155_v31, %v1018_v18 }
 0x15d   : > { %2478 = vmatmul.mubr.msk.f32.gmra.mrb[10].mxu1 %vm1183_vm14, %v1172_v47 }
 0x15e   : > { %v866_v11 = vpop.permute.xlu0 %865 }
 0x15f   : > { %v629_v57 = vpop.permute.xlu1 %628  ;;  %v1123_v49 = vsel %vm1109_vm10, %v1106_v44, %v866_v11  ;;  %v1400_v44 = vld [vmem:[%s4046_s3 + $0x18] sm:$0xff] }
 0x160   : > { %v1073_v30 = vsel %vm1059_vm7, %v1057_v9, %v629_v57 }
 0x162   : > { %v631_v37 = vpop.permute.xlu0 %630 }
 0x163   : > { %v913_v7 = vpop.permute.xlu1 %912  ;;  %v1074_v0 = vsel %vm1059_vm7, %v1058_v22, %v631_v37  ;;  %vm1815_vm7 = vcmask 457728  }
 0x164   : > { %v1139_v53 = vsel %vm1126_vm11, %v1122_v60, %v913_v7 }
 0x166   : > { %v915_v23 = vpop.permute.xlu0 %914 }
 0x167   : > { %v684_v34 = vpop.permute.xlu1 %683  ;;  %v1140_v58 = vsel %vm1126_vm11, %v1123_v49, %v915_v23 }
 0x168   : > { %v1090_v16 = vsel %vm1075_vm8, %v1073_v30, %v684_v34 }
 0x16a   : > { %v686_v50 = vpop.permute.xlu0 %685 }
 0x16b   : > { %v967_v41 = vpop.permute.xlu1 %966  ;;  %v1091_v54 = vsel %vm1075_vm8, %v1074_v0, %v686_v50  ;;  %vm1824_vm8 = vcmask 523264  }
 0x16c   : > { %v1156_v24 = vsel %vm1143_vm12, %v1139_v53, %v967_v41 }
 0x16e   : > { %v969_v5 = vpop.permute.xlu0 %968 }
 0x16f   : > { %v780_v10 = vpop.permute.xlu1 %779  ;;  %v1157_v3 = vsel %vm1143_vm12, %v1140_v58, %v969_v5 }
 0x170   : > { %v1107_v38 = vsel %vm1092_vm9, %v1090_v16, %v780_v10 }
 0x172   : > { %v782_v62 = vpop.permute.xlu0 %781 }
 0x173   : > { %v1020_v55 = vpop.permute.xlu1 %1019  ;;  %v1108_v21 = vsel %vm1092_vm9, %v1091_v54, %v782_v62  ;;  %v1399_v62 = vld [vmem:[%s4046_s3 + $0x10] sm:$0xff]  ;;  %v1405_v54 = vld [vmem:[%s4046_s3 + $0x40] sm:$0xff]  ;;  %vm1839_vm9 = vcmask 588800  }
 0x174   : > { %v1173_v59 = vsel %vm1160_vm13, %v1156_v24, %v1020_v55  ;;  %v2530_v55 = vpack.c.bf16 %v1400_v44, %v1399_v62 }
 0x175   : > { %2480 = vmatprep.mubr.msk.f32.mxu1 %vm1183_vm14, %v1173_v59 }
 0x176   : > { %v1022_v42 = vpop.permute.xlu0 %1021  ;;  %2531 = vmatprep.subr.bf16.mxu1 %v2530_v55 }
 0x177   : > { %v1174_v25 = vsel %vm1160_vm13, %v1157_v3, %v1022_v42  ;;  %v868_v63 = vpop.permute.xlu1 %867  ;;  %2533 = vmatpush3.bf16.msra.mxu1 %v2530_v55  ;;  %v1401_v3 = vld [vmem:[%s4046_s3 + $0x20] sm:$0xff]  ;;  %v1402_v42 = vld [vmem:[%s4046_s3 + $0x28] sm:$0xff] }
 0x178   : > { %2481 = vmatmul.mubr.msk.f32.gmra.mrb[12].mxu1 %vm1183_vm14, %v1174_v25  ;;  %v1124_v14 = vsel %vm1109_vm10, %v1107_v38, %v868_v63  ;;  %v2534_v63 = vpack.c.bf16 %v1402_v42, %v1401_v3  ;;  %v1403_v38 = vld [vmem:[%s4046_s3 + $0x30] sm:$0xff] }
 0x17a   : > { %v917_v32 = vpop.permute.xlu0 %916  ;;  %2535 = vmatprep.subr.bf16.mxu1 %v2534_v63 }
 0x17b   : > { %v870_v36 = vpop.permute.xlu1 %869  ;;  %v1141_v12 = vsel %vm1126_vm11, %v1124_v14, %v917_v32  ;;  %2537 = vmatpush3.bf16.msra.mxu1 %v2534_v63 }
 0x17c   : > { %v1125_v39 = vsel %vm1109_vm10, %v1108_v21, %v870_v36 }
 0x17e   : > { %v971_v8 = vpop.permute.xlu0 %970 }
 0x17f   : > { %v919_v17 = vpop.permute.xlu1 %918  ;;  %v1158_v45 = vsel %vm1143_vm12, %v1141_v12, %v971_v8 }
 0x180   : > { %v1142_v33 = vsel %vm1126_vm11, %v1125_v39, %v919_v17  ;;  %v1404_v17 = vld [vmem:[%s4046_s3 + $0x38] sm:$0xff] }
 0x181   : > { %v2538_v14 = vpack.c.bf16 %v1404_v17, %v1403_v38 }
 0x182   : > { %v1024_v28 = vpop.permute.xlu0 %1023 }
 0x183   : > { %v1175_v46 = vsel %vm1160_vm13, %v1158_v45, %v1024_v28  ;;  %v973_v29 = vpop.permute.xlu1 %972  ;;  %2539 = vmatprep.subr.bf16.mxu1 %v2538_v14 }
 0x184   : > { %2483 = vmatprep.mubr.msk.f32.mxu1 %vm1183_vm14, %v1175_v46  ;;  %v1159_v48 = vsel %vm1143_vm12, %v1142_v33, %v973_v29  ;;  %2541 = vmatpush3.bf16.msra.mxu1 %v2538_v14 }
 0x185   : > { %2502 = vmatprep.subr.mxu1 %v1405_v54 }
 0x187   : > { %v1026_v6 = vpop.permute.xlu1 %1025 }
 0x188   : > { %v1176_v56 = vsel %vm1160_vm13, %v1159_v48, %v1026_v6  ;;  %2503 = vmatpush3.msra.mxu1 %v1405_v54 }
 0x189   : > { %2484 = vmatmul.mubr.msk.f32.gmra.mrb[14].mxu1 %vm1183_vm14, %v1176_v56 }
 0x190   : > { %v2464_v61 = vpop.f32.mrb[0].mxu1 }
 0x191   : > { %v1308_v35 = vadd.f32 %v2464_v61, %v3543_v15  ;;  %v1302_v13 = vpop.f32.mrb[1].mxu1 }
 0x192   : > { %v1303_v51 = vadd.f32 %v3543_v15, %v1302_v13 }
 0x193   : > { %v1382_v19 = vmax.f32 %v1308_v35, 0.0 }
 0x194   : > { %v1381_v31 = vmax.f32 %v1303_v51, 0.0 }
 0x195   : > { %v1424_v18 = vrot.slane %v1382_v19, 7 }
 0x196   : > { %v1423_v47 = vrot.slane %v1381_v31, 7 }
 0x197   : > { %v1474_v11 = vsel %vm346_vm0, %v1424_v18, 0.0 }
 0x198   : > { %v1595_v57 = vrot.slane %v1474_v11, 1  ;;  %v1639_v37 = vrot.slane %v1474_v11, 2  ;;  %v1425_v7 = vsel %vm346_vm0, %v1423_v47, %v1424_v18  ;;  %v1466_v23 = vsel %vm346_vm0, 0.0, %v1423_v47 }
 0x199   : > { %1566 = vrot.lane.b32.xlu1 %v1425_v7, %s2747_s8  ;;  %v1593_v34 = vrot.slane %v1425_v7, 1  ;;  %v1637_v50 = vrot.slane %v1425_v7, 2  ;;  %v1592_v41 = vrot.slane %v1466_v23, 1  ;;  %v1636_v27 = vrot.slane %v1466_v23, 2  ;;  %1564 = vrot.lane.b32.xlu0 %v1466_v23, %s2747_s8 }
 0x19b   : > { %v1638_v40 = vsel %vm564_vm2, %v1636_v27, %v1637_v50  ;;  %v1594_v5 = vsel %vm481_vm1, %v1592_v41, %v1593_v34  ;;  %v1596_v26 = vsel %vm481_vm1, %v1593_v34, %v1595_v57  ;;  %v1640_v10 = vsel %vm564_vm2, %v1637_v50, %v1639_v37 }
 0x19d   : > { %1656 = vrot.lane.b32.xlu1 %v1638_v40, %s2751_s22  ;;  %1612 = vrot.lane.b32.xlu0 %v1594_v5, %s2752_s23 }
 0x1a1   : > { %1614 = vrot.lane.b32.xlu0 %v1596_v26, %s2752_s23 }
 0x1a5   : > { %1658 = vrot.lane.b32.xlu0 %v1640_v10, %s2751_s22 }
 0x1b0   : > { %v2467_v60 = vpop.f32.mrb[2].mxu1 }
 0x1b1   : > { %v1318_v52 = vadd.f32 %v2467_v60, %v3543_v15  ;;  %v1312_v53 = vpop.f32.mrb[3].mxu1 }
 0x1b2   : > { %v1313_v24 = vadd.f32 %v3543_v15, %v1312_v53 }
 0x1b3   : > { %v1384_v49 = vmax.f32 %v1318_v52, 0.0 }
 0x1b4   : > { %v1383_v59 = vmax.f32 %v1313_v24, 0.0 }
 0x1b5   : > { %v1427_v58 = vrot.slane %v1384_v49, 7 }
 0x1b6   : > { %v1426_v25 = vrot.slane %v1383_v59, 7 }
 0x1b7   : > { %v1475_v32 = vsel %vm346_vm0, %v1427_v58, 0.0 }
 0x1b8   : > { %v1491_v36 = vrot.slane %v1475_v32, 1  ;;  %v3582_v9 = vsel %vm346_vm0, 0.0, %v1426_v25  ;;  %v3585_v30 = vsel %vm346_vm0, %v1426_v25, %v1427_v58  ;;  %v1527_v0 = vrot.slane %v1475_v32, 2  ;;  %v1504_v25 = vpop.permute.xlu0 %1503 }
 0x1b9   : > { %1681 = vrot.lane.b32.xlu1 %v3582_v9, %s2753_s16  ;;  %v1488_v16 = vrot.slane %v3582_v9, 1  ;;  %v1489_v8 = vrot.slane %v3585_v30, 1  ;;  %1683 = vrot.lane.b32.xlu0 %v3585_v30, %s2753_s16  ;;  %v1524_v45 = vrot.slane %v3582_v9, 2  ;;  %v1525_v28 = vrot.slane %v3585_v30, 2 }
 0x1bb   : > { %v1490_v22 = vsel %vm481_vm1, %v1488_v16, %v1489_v8  ;;  %v1492_v12 = vsel %vm481_vm1, %v1489_v8, %v1491_v36  ;;  %v1526_v46 = vsel %vm564_vm2, %v1524_v45, %v1525_v28  ;;  %v1528_v29 = vsel %vm564_vm2, %v1525_v28, %v1527_v0 }
 0x1bd   : > { %1505 = vrot.lane.b32.xlu1 %v1490_v22, %s4055_s13  ;;  %1507 = vrot.lane.b32.xlu0 %v1492_v12, %s4055_s13 }
 0x1c1   : > { %1541 = vrot.lane.b32.xlu1 %v1526_v46, %s2750_s18  ;;  %1543 = vrot.lane.b32.xlu0 %v1528_v29, %s2750_s18 }
 0x1c5   : > { %1711 = vrot.lane.b32.xlu1 %v1490_v22, %s2754_s14  ;;  %1713 = vrot.lane.b32.xlu0 %v1492_v12, %s2754_s14 }
 0x1c9   : > { %1740 = vrot.lane.b32.xlu1 %v1526_v46, %s2755_s15 }
 0x1cd   : > { %1742 = vrot.lane.b32.xlu1 %v1528_v29, %s2755_s15 }
 0x1d0   : > { %v2470_v21 = vpop.f32.mrb[4].mxu1 }
 0x1d1   : > { %v1328_v39 = vadd.f32 %v2470_v21, %v3543_v15  ;;  %v1322_v33 = vpop.f32.mrb[5].mxu1 }
 0x1d2   : > { %v1323_v48 = vadd.f32 %v3543_v15, %v1322_v33  ;;  %v1540_v33 = vpop.permute.xlu1 %1539 }
 0x1d3   : > { %v1386_v6 = vmax.f32 %v1328_v39, 0.0 }
 0x1d4   : > { %v1385_v56 = vmax.f32 %v1323_v48, 0.0 }
 0x1d5   : > { %v1430_v61 = vrot.slane %v1386_v6, 7 }
 0x1d6   : > { %v1429_v35 = vrot.slane %v1385_v56, 7 }
 0x1d7   : > { %v1476_v13 = vsel %vm346_vm0, %v1430_v61, 0.0 }
 0x1d8   : > { %v1600_v51 = vrot.slane %v1476_v13, 1  ;;  %v1644_v19 = vrot.slane %v1476_v13, 2  ;;  %v1468_v31 = vsel %vm346_vm0, 0.0, %v1429_v35  ;;  %v1431_v18 = vsel %vm346_vm0, %v1429_v35, %v1430_v61 }
 0x1d9   : > { %1568 = vrot.lane.b32.xlu1 %v1468_v31, %s2747_s8  ;;  %v1597_v47 = vrot.slane %v1468_v31, 1  ;;  %v1641_v11 = vrot.slane %v1468_v31, 2  ;;  %1570 = vrot.lane.b32.xlu0 %v1431_v18, %s2747_s8  ;;  %v1598_v57 = vrot.slane %v1431_v18, 1  ;;  %v1642_v37 = vrot.slane %v1431_v18, 2 }
 0x1db   : > { %v1643_v7 = vsel %vm564_vm2, %v1641_v11, %v1642_v37  ;;  %v1599_v23 = vsel %vm481_vm1, %v1597_v47, %v1598_v57  ;;  %v1645_v34 = vsel %vm564_vm2, %v1642_v37, %v1644_v19  ;;  %v1601_v50 = vsel %vm481_vm1, %v1598_v57, %v1600_v51 }
 0x1dc   : > { %v1765_v11 = vsel %vm1764_vm15, 0.0, %v1504_v25 }
 0x1dd   : > { %1660 = vrot.lane.b32.xlu0 %v1643_v7, %s2751_s22  ;;  %1616 = vrot.lane.b32.xlu1 %v1599_v23, %s2752_s23  ;;  %v1773_v23 = vsel %vm1772_vm3, %v1765_v11, %v1540_v33 }
 0x1e1   : > { %1662 = vrot.lane.b32.xlu0 %v1645_v34, %s2751_s22  ;;  %1618 = vrot.lane.b32.xlu1 %v1601_v50, %s2752_s23 }
 0x1f0   : > { %v2473_v41 = vpop.f32.mrb[6].mxu1 }
 0x1f1   : > { %v1338_v27 = vadd.f32 %v2473_v41, %v3543_v15  ;;  %v1332_v40 = vpop.f32.mrb[7].mxu1 }
 0x1f2   : > { %v1333_v5 = vadd.f32 %v3543_v15, %v1332_v40 }
 0x1f3   : > { %v1388_v26 = vmax.f32 %v1338_v27, 0.0 }
 0x1f4   : > { %v1387_v10 = vmax.f32 %v1333_v5, 0.0 }
 0x1f5   : > { %v1433_v4 = vrot.slane %v1388_v26, 7 }
 0x1f6   : > { %v1432_v43 = vrot.slane %v1387_v10, 7 }
 0x1f7   : > { %v1477_v20 = vsel %vm346_vm0, %v1433_v4, 0.0 }
 0x1f8   : > { %v3635_v60 = vsel %vm346_vm0, 0.0, %v1432_v43  ;;  %v3638_v52 = vsel %vm346_vm0, %v1432_v43, %v1433_v4  ;;  %v1496_v59 = vrot.slane %v1477_v20, 1  ;;  %v1532_v58 = vrot.slane %v1477_v20, 2 }
 0x1f9   : > { %1685 = vrot.lane.b32.xlu1 %v3635_v60, %s2753_s16  ;;  %v1493_v53 = vrot.slane %v3635_v60, 1  ;;  %v1529_v62 = vrot.slane %v3635_v60, 2  ;;  %1687 = vrot.lane.b32.xlu0 %v3638_v52, %s2753_s16  ;;  %v1494_v44 = vrot.slane %v3638_v52, 1  ;;  %v1530_v24 = vrot.slane %v3638_v52, 2 }
 0x1fb   : > { %v1531_v55 = vsel %vm564_vm2, %v1529_v62, %v1530_v24  ;;  %v1495_v49 = vsel %vm481_vm1, %v1493_v53, %v1494_v44  ;;  %v1497_v3 = vsel %vm481_vm1, %v1494_v44, %v1496_v59  ;;  %v1533_v42 = vsel %vm564_vm2, %v1530_v24, %v1532_v58 }
 0x1fd   : > { %1545 = vrot.lane.b32.xlu1 %v1531_v55, %s2750_s18  ;;  %1509 = vrot.lane.b32.xlu0 %v1495_v49, %s4055_s13 }
 0x201   : > { %1715 = vrot.lane.b32.xlu1 %v1495_v49, %s2754_s14  ;;  %1511 = vrot.lane.b32.xlu0 %v1497_v3, %s4055_s13 }
 0x205   : > { %1744 = vrot.lane.b32.xlu1 %v1531_v55, %s2755_s15  ;;  %1547 = vrot.lane.b32.xlu0 %v1533_v42, %s2750_s18 }
 0x209   : > { %1746 = vrot.lane.b32.xlu1 %v1533_v42, %s2755_s15  ;;  %1717 = vrot.lane.b32.xlu0 %v1497_v3, %s2754_s14 }
 0x20b   : > { %v1565_v17 = vpop.permute.xlu0 %1564  ;;  %v1567_v13 = vpop.permute.xlu1 %1566 }
 0x20c   : > { %v1780_v5 = vsel %vm1160_vm13, %v1773_v23, %v1565_v17  ;;  %v1781_v25 = vsel %vm1160_vm13, %v1773_v23, %v1567_v13 }
 0x20f   : > { %v1613_v48 = vpop.permute.xlu0 %1612  ;;  %v1657_v19 = vpop.permute.xlu1 %1656 }
 0x210   : > { %v2476_v63 = vpop.f32.mrb[8].mxu1  ;;  %v1789_v10 = vsel %vm1788_vm4, %v1780_v5, %v1613_v48 }
 0x211   : > { %v1348_v32 = vadd.f32 %v2476_v63, %v3543_v15  ;;  %v1342_v36 = vpop.f32.mrb[9].mxu1  ;;  %v1798_v62 = vsel %vm1797_vm5, %v1789_v10, %v1657_v19 }
 0x212   : > { %v1343_v16 = vadd.f32 %v3543_v15, %v1342_v36 }
 0x213   : > { %v1390_v8 = vmax.f32 %v1348_v32, 0.0  ;;  %v1615_v51 = vpop.permute.xlu0 %1614 }
 0x214   : > { %v1389_v38 = vmax.f32 %v1343_v16, 0.0  ;;  %v1790_v36 = vsel %vm1788_vm4, %v1781_v25, %v1615_v51 }
 0x215   : > { %v1436_v14 = vrot.slane %v1390_v8, 7 }
 0x216   : > { %v1435_v22 = vrot.slane %v1389_v38, 7 }
 0x217   : > { %v1478_v12 = vsel %vm346_vm0, %v1436_v14, 0.0  ;;  %v1659_v31 = vpop.permute.xlu0 %1658 }
 0x218   : > { %v1605_v0 = vrot.slane %v1478_v12, 1  ;;  %v1649_v45 = vrot.slane %v1478_v12, 2  ;;  %v1470_v28 = vsel %vm346_vm0, 0.0, %v1435_v22  ;;  %v1437_v29 = vsel %vm346_vm0, %v1435_v22, %v1436_v14 }
 0x219   : > { %1572 = vrot.lane.b32.xlu1 %v1470_v28, %s2747_s8  ;;  %v1602_v54 = vrot.slane %v1470_v28, 1  ;;  %v1646_v46 = vrot.slane %v1470_v28, 2  ;;  %1574 = vrot.lane.b32.xlu0 %v1437_v29, %s2747_s8  ;;  %v1603_v21 = vrot.slane %v1437_v29, 1  ;;  %v1647_v39 = vrot.slane %v1437_v29, 2 }
 0x21a   : > { %v1799_v14 = vsel %vm1797_vm5, %v1790_v36, %v1659_v31 }
 0x21b   : > { %v1648_v6 = vsel %vm564_vm2, %v1646_v46, %v1647_v39  ;;  %v1604_v56 = vsel %vm481_vm1, %v1602_v54, %v1603_v21  ;;  %v1650_v61 = vsel %vm564_vm2, %v1647_v39, %v1649_v45  ;;  %v1606_v35 = vsel %vm481_vm1, %v1603_v21, %v1605_v0 }
 0x21d   : > { %1620 = vrot.lane.b32.xlu1 %v1604_v56, %s2752_s23  ;;  %1664 = vrot.lane.b32.xlu0 %v1648_v6, %s2751_s22 }
 0x221   : > { %1622 = vrot.lane.b32.xlu1 %v1606_v35, %s2752_s23  ;;  %1666 = vrot.lane.b32.xlu0 %v1650_v61, %s2751_s22 }
 0x22b   : > { %v1682_v18 = vpop.permute.xlu1 %1681  ;;  %v1684_v47 = vpop.permute.xlu0 %1683 }
 0x22c   : > { %v1807_v44 = vsel %vm1806_vm6, %v1798_v62, %v1682_v18  ;;  %v1808_v12 = vsel %vm1806_vm6, %v1799_v14, %v1684_v47 }
 0x22f   : > { %v3676_v57 = vpop.permute.xlu1 %1505  ;;  %v3678_v37 = vpop.permute.xlu0 %1507 }
 0x230   : > { %v2479_v7 = vpop.f32.mrb[10].mxu1 }
 0x231   : > { %v1358_v34 = vadd.f32 %v2479_v7, %v3543_v15  ;;  %v1352_v50 = vpop.f32.mrb[11].mxu1 }
 0x232   : > { %v1353_v41 = vadd.f32 %v3543_v15, %v1352_v50 }
 0x233   : > { %v1392_v27 = vmax.f32 %v1358_v34, 0.0  ;;  %v3683_v40 = vpop.permute.xlu1 %1541  ;;  %v3687_v20 = vpop.permute.xlu0 %1543 }
 0x234   : > { %v1391_v26 = vmax.f32 %v1353_v41, 0.0 }
 0x235   : > { %v1439_v4 = vrot.slane %v1392_v27, 7 }
 0x236   : > { %v1438_v43 = vrot.slane %v1391_v26, 7 }
 0x237   : > { %v1712_v53 = vpop.permute.xlu1 %1711  ;;  %v1479_v24 = vsel %vm346_vm0, %v1439_v4, 0.0  ;;  %v1714_v16 = vpop.permute.xlu0 %1713 }
 0x238   : > { %v3693_v55 = vsel %vm346_vm0, 0.0, %v1438_v43  ;;  %v3696_v49 = vsel %vm346_vm0, %v1438_v43, %v1439_v4  ;;  %v1816_v63 = vsel %vm1815_vm7, %v1807_v44, %v1712_v53  ;;  %v1501_v22 = vrot.slane %v1479_v24, 1 }
 0x239   : > { %1689 = vrot.lane.b32.xlu1 %v3693_v55, %s2753_s16  ;;  %v1498_v59 = vrot.slane %v3693_v55, 1  ;;  %v1534_v58 = vrot.slane %v3693_v55, 2  ;;  %1691 = vrot.lane.b32.xlu0 %v3696_v49, %s2753_s16  ;;  %v1499_v3 = vrot.slane %v3696_v49, 1  ;;  %v1535_v42 = vrot.slane %v3696_v49, 2 }
 0x23a   : > { %v1817_v0 = vsel %vm1815_vm7, %v1808_v12, %v1714_v16  ;;  %v1537_v54 = vrot.slane %v1479_v24, 2 }
 0x23b   : > { %v1741_v32 = vpop.permute.xlu1 %1740  ;;  %v1536_v38 = vsel %vm564_vm2, %v1534_v58, %v1535_v42  ;;  %v1500_v17 = vsel %vm481_vm1, %v1498_v59, %v1499_v3  ;;  %v1502_v46 = vsel %vm481_vm1, %v1499_v3, %v1501_v22 }
 0x23c   : > { %v1825_v8 = vsel %vm1824_vm8, %v1816_v63, %v1741_v32  ;;  %v1538_v29 = vsel %vm564_vm2, %v1535_v42, %v1537_v54 }
 0x23d   : > { %2504 = vmatprep.mubr.msk.f32.mxu1 %vm1839_vm9, %v1825_v8  ;;  %1549 = vrot.lane.b32.xlu1 %v1536_v38, %s2750_s18 }
 0x23e   : > { %1513 = vrot.lane.b32.xlu0 %v1500_v17, %s4055_s13 }
 0x23f   : > { %v1743_v45 = vpop.permute.xlu1 %1742 }
 0x240   : > { %v1826_v28 = vsel %vm1824_vm8, %v1817_v0, %v1743_v45 }
 0x241   : > { %2505 = vmatmul.mubr.msk.f32.vlgmr.msra.gmra.mrb[16].mxu1 %vm1839_vm9, %v1826_v28  ;;  %1719 = vrot.lane.b32.xlu1 %v1500_v17, %s2754_s14 }
 0x242   : > { %1515 = vrot.lane.b32.xlu0 %v1502_v46, %s4055_s13  ;;  %s2416_s13 = sshll.u32 %s2823_s28, 9  ;;  %s2760_s28 = smov [#allocation2]  }
 0x245   : > { %1748 = vrot.lane.b32.xlu1 %v1536_v38, %s2755_s15 }
 0x246   : > { %1551 = vrot.lane.b32.xlu0 %v1538_v29, %s2750_s18 }
 0x24a   : > { %1721 = vrot.lane.b32.xlu0 %v1502_v46, %s2754_s14  ;;  %v1766_v46 = vsel %vm1764_vm15, %v3582_v9, %v3676_v57  ;;  %v1767_v9 = vsel %vm1764_vm15, %v3585_v30, %v3678_v37 }
 0x24b   : > { %v2482_v21 = vpop.f32.mrb[12].mxu1  ;;  %v1569_v5 = vpop.permute.xlu1 %1568  ;;  %v1775_v57 = vsel %vm1772_vm3, %v1767_v9, %v3687_v20 }
 0x24c   : > { %v1368_v39 = vadd.f32 %v2482_v21, %v3543_v15  ;;  %v1362_v33 = vpop.f32.mrb[13].mxu1  ;;  %v1571_v26 = vpop.permute.xlu0 %1570 }
 0x24d   : > { %v1363_v48 = vadd.f32 %v3543_v15, %v1362_v33 }
 0x24e   : > { %v1394_v6 = vmax.f32 %v1368_v39, 0.0  ;;  %1750 = vrot.lane.b32.xlu0 %v1538_v29, %s2755_s15  ;;  %v1774_v39 = vsel %vm1772_vm3, %v1766_v46, %v3683_v40 }
 0x24f   : > { %v1393_v56 = vmax.f32 %v1363_v48, 0.0  ;;  %v1617_v24 = vpop.permute.xlu1 %1616  ;;  %v1782_v48 = vsel %vm1160_vm13, %v1774_v39, %v1569_v5 }
 0x250   : > { %v1442_v61 = vrot.slane %v1394_v6, 7  ;;  %v1661_v59 = vpop.permute.xlu0 %1660 }
 0x251   : > { %v1441_v35 = vrot.slane %v1393_v56, 7  ;;  %v1791_v56 = vsel %vm1788_vm4, %v1782_v48, %v1617_v24 }
 0x252   : > { %v1480_v13 = vsel %vm346_vm0, %v1442_v61, 0.0  ;;  %v1800_v40 = vsel %vm1797_vm5, %v1791_v56, %v1661_v59 }
 0x253   : > { %v1610_v51 = vrot.slane %v1480_v13, 1  ;;  %v1654_v19 = vrot.slane %v1480_v13, 2  ;;  %v1472_v31 = vsel %vm346_vm0, 0.0, %v1441_v35  ;;  %v1443_v18 = vsel %vm346_vm0, %v1441_v35, %v1442_v61  ;;  %v1619_v17 = vpop.permute.xlu1 %1618 }
 0x254   : > { %1576 = vrot.lane.b32.xlu1 %v1472_v31, %s2747_s8  ;;  %v1607_v47 = vrot.slane %v1472_v31, 1  ;;  %v1651_v11 = vrot.slane %v1472_v31, 2  ;;  %1578 = vrot.lane.b32.xlu0 %v1443_v18, %s2747_s8  ;;  %v1608_v7 = vrot.slane %v1443_v18, 1  ;;  %v1652_v23 = vrot.slane %v1443_v18, 2  ;;  %v1663_v14 = vpop.permute.xlu0 %1662  ;;  %s3998_s8 = scalar_lea.hbm %s4050_s7, %s2416_s13 }
 0x255   : > { %v1783_v13 = vsel %vm1160_vm13, %v1775_v57, %v1571_v26 }
 0x256   : > { %v1611_v34 = vsel %vm481_vm1, %v1608_v7, %v1610_v51  ;;  %v1609_v50 = vsel %vm481_vm1, %v1607_v47, %v1608_v7  ;;  %v1653_v41 = vsel %vm564_vm2, %v1651_v11, %v1652_v23  ;;  %v1655_v27 = vsel %vm564_vm2, %v1652_v23, %v1654_v19 }
 0x257   : > { %v1792_v51 = vsel %vm1788_vm4, %v1783_v13, %v1619_v17 }
 0x258   : > { %1626 = vrot.lane.b32.xlu0 %v1611_v34, %s2752_s23  ;;  %1624 = vrot.lane.b32.xlu1 %v1609_v50, %s2752_s23  ;;  %v1801_v20 = vsel %vm1797_vm5, %v1792_v51, %v1663_v14 }
 0x25c   : > { %1668 = vrot.lane.b32.xlu1 %v1653_v41, %s2751_s22  ;;  %v2485_v10 = vpop.f32.mrb[14].mxu1 }
 0x25d   : > { %v1378_v4 = vadd.f32 %v2485_v10, %v3543_v15  ;;  %v1372_v43 = vpop.f32.mrb[15].mxu1 }
 0x25e   : > { %v1373_v53 = vadd.f32 %v3543_v15, %v1372_v43 }
 0x25f   : > { %v1396_v62 = vmax.f32 %v1378_v4, 0.0 }
 0x260   : > { %v1395_v44 = vmax.f32 %v1373_v53, 0.0  ;;  %1670 = vrot.lane.b32.xlu1 %v1655_v27, %s2751_s22 }
 0x261   : > { %v1445_v58 = vrot.slane %v1396_v62, 7 }
 0x262   : > { %v1444_v3 = vrot.slane %v1395_v44, 7 }
 0x263   : > { %v1481_v42 = vsel %vm346_vm0, %v1445_v58, 0.0 }
 0x264   : > { %v1709_v25 = vrot.slane %v1481_v42, 1  ;;  %v1738_v63 = vrot.slane %v1481_v42, 2  ;;  %v1473_v32 = vsel %vm346_vm0, 0.0, %v1444_v3  ;;  %v1446_v36 = vsel %vm346_vm0, %v1444_v3, %v1445_v58 }
 0x265   : > { %1693 = vrot.lane.b32.xlu0 %v1473_v32, %s2753_s16  ;;  %v1706_v16 = vrot.slane %v1473_v32, 1  ;;  %v1735_v15 = vrot.slane %v1473_v32, 2  ;;  %1695 = vrot.lane.b32.xlu1 %v1446_v36, %s2753_s16  ;;  %v1707_v8 = vrot.slane %v1446_v36, 1  ;;  %v1736_v38 = vrot.slane %v1446_v36, 2 }
 0x267   : > { %v1710_v22 = vsel %vm481_vm1, %v1707_v8, %v1709_v25  ;;  %v1708_v12 = vsel %vm481_vm1, %v1706_v16, %v1707_v8  ;;  %v1739_v0 = vsel %vm564_vm2, %v1736_v38, %v1738_v63  ;;  %v1737_v45 = vsel %vm564_vm2, %v1735_v15, %v1736_v38 }
 0x269   : > { %1725 = vrot.lane.b32.xlu1 %v1710_v22, %s2754_s14  ;;  %1723 = vrot.lane.b32.xlu0 %v1708_v12, %s2754_s14 }
 0x26b   : > { %v1686_v28 = vpop.permute.xlu1 %1685  ;;  %v1688_v54 = vpop.permute.xlu0 %1687 }
 0x26c   : > { %v1810_v11 = vsel %vm1806_vm6, %v1801_v20, %v1688_v54  ;;  %v3825_v20 = vld [vmem:[%s4047_s4] ss:$0 sm:$0xff] }
 0x26d   : > { %1754 = vrot.lane.b32.xlu1 %v1739_v0, %s2755_s15  ;;  %1752 = vrot.lane.b32.xlu0 %v1737_v45, %s2755_s15 }
 0x26f   : > { %v1546_v29 = vpop.permute.xlu1 %1545  ;;  %v1510_v21 = vpop.permute.xlu0 %1509 }
 0x270   : > { %v1768_v33 = vsel %vm1764_vm15, %v3635_v60, %v1510_v21  ;;  %v1809_v60 = vsel %vm1806_vm6, %v1800_v40, %v1686_v28 }
 0x271   : > { %v1776_v6 = vsel %vm1772_vm3, %v1768_v33, %v1546_v29 }
 0x273   : > { %v1716_v61 = vpop.permute.xlu1 %1715  ;;  %v1512_v35 = vpop.permute.xlu0 %1511 }
 0x274   : > { %v1818_v19 = vsel %vm1815_vm7, %v1809_v60, %v1716_v61  ;;  %v1769_v31 = vsel %vm1764_vm15, %v3638_v52, %v1512_v35 }
 0x277   : > { %v1745_v18 = vpop.permute.xlu1 %1744  ;;  %v1548_v47 = vpop.permute.xlu0 %1547 }
 0x278   : > { %v1827_v30 = vsel %vm1824_vm8, %v1818_v19, %v1745_v18  ;;  %v1777_v37 = vsel %vm1772_vm3, %v1769_v31, %v1548_v47 }
 0x279   : > { %2507 = vmatprep.mubr.msk.f32.mxu1 %vm1839_vm9, %v1827_v30 }
 0x27b   : > { %v1747_v7 = vpop.permute.xlu1 %1746  ;;  %v1718_v23 = vpop.permute.xlu0 %1717 }
 0x27c   : > { %v1819_v34 = vsel %vm1815_vm7, %v1810_v11, %v1718_v23 }
 0x27d   : > { %v1828_v50 = vsel %vm1824_vm8, %v1819_v34, %v1747_v7 }
 0x27e   : > { %2508 = vmatmul.mubr.msk.f32.gmra.mrb[18].mxu1 %vm1839_vm9, %v1828_v50 }
 0x28b   : > { %v1573_v52 = vpop.permute.xlu1 %1572  ;;  %v1575_v41 = vpop.permute.xlu0 %1574 }
 0x28c   : > { %v1784_v44 = vsel %vm1160_vm13, %v1776_v6, %v1573_v52  ;;  %v1785_v16 = vsel %vm1160_vm13, %v1777_v37, %v1575_v41 }
 0x28f   : > { %v1621_v27 = vpop.permute.xlu1 %1620  ;;  %v1665_v5 = vpop.permute.xlu0 %1664 }
 0x290   : > { %v1793_v24 = vsel %vm1788_vm4, %v1784_v44, %v1621_v27 }
 0x291   : > { %v1802_v3 = vsel %vm1797_vm5, %v1793_v24, %v1665_v5 }
 0x293   : > { %v1623_v26 = vpop.permute.xlu1 %1622  ;;  %v1667_v10 = vpop.permute.xlu0 %1666 }
 0x294   : > { %v1794_v15 = vsel %vm1788_vm4, %v1785_v16, %v1623_v26  ;;  %v1978_v16 = vld [vmem:[%s4048_s5 + $0x8] sm:$0xff] }
 0x295   : > { %v1803_v38 = vsel %vm1797_vm5, %v1794_v15, %v1667_v10 }
 0x2ab   : > { %v1690_v4 = vpop.permute.xlu1 %1689  ;;  %v1692_v43 = vpop.permute.xlu0 %1691 }
 0x2ac   : > { %v1811_v42 = vsel %vm1806_vm6, %v1802_v3, %v1690_v4  ;;  %v1812_v17 = vsel %vm1806_vm6, %v1803_v38, %v1692_v43  ;;  %v1979_v38 = vld [vmem:[%s4048_s5 + $0x10] sm:$0xff] }
 0x2af   : > { %v1550_v53 = vpop.permute.xlu1 %1549 }
 0x2b0   : > { %v1514_v62 = vpop.permute.xlu0 %1513 }
 0x2b1   : > { %v1770_v21 = vsel %vm1764_vm15, %v3693_v55, %v1514_v62 }
 0x2b2   : > { %v1778_v56 = vsel %vm1772_vm3, %v1770_v21, %v1550_v53 }
 0x2b3   : > { %v1720_v59 = vpop.permute.xlu1 %1719 }
 0x2b4   : > { %v1516_v58 = vpop.permute.xlu0 %1515  ;;  %v1820_v25 = vsel %vm1815_vm7, %v1811_v42, %v1720_v59 }
 0x2b5   : > { %v1771_v48 = vsel %vm1764_vm15, %v3696_v49, %v1516_v58 }
 0x2b7   : > { %v1749_v63 = vpop.permute.xlu1 %1748 }
 0x2b8   : > { %v1552_v32 = vpop.permute.xlu0 %1551  ;;  %v1829_v36 = vsel %vm1824_vm8, %v1820_v25, %v1749_v63 }
 0x2b9   : > { %2510 = vmatprep.mubr.msk.f32.mxu1 %vm1839_vm9, %v1829_v36  ;;  %v1779_v6 = vsel %vm1772_vm3, %v1771_v48, %v1552_v32  ;;  %v1977_v36 = vld [vmem:[%s4048_s5] sm:$0xff] }
 0x2ba   : > { %v2543_v15 = vpack.c.bf16 %v1978_v16, %v1977_v36 }
 0x2bc   : > { %v1722_v8 = vpop.permute.xlu0 %1721 }
 0x2bd   : > { %v1821_v14 = vsel %vm1815_vm7, %v1812_v17, %v1722_v8  ;;  %v2757_v8 = vmov 0.0|0.0   ;;  %v1980_v17 = vld [vmem:[%s4048_s5 + $0x18] sm:$0xff] }
 0x2be   : > { %2542 = vmatprep.subr.bf16.mxu0 %v2757_v8 }
 0x2bf   : > { %2544 = vmatpush1.bf16.msra.mxu0 %v2543_v15 }
 0x2c0   : > { %v1751_v22 = vpop.permute.xlu0 %1750  ;;  %2545 = vmatprep.subr.bf16.mxu0 %v2757_v8 }
 0x2c1   : > { %v1830_v12 = vsel %vm1824_vm8, %v1821_v14, %v1751_v22  ;;  %v2546_v14 = vpack.c.bf16 %v1980_v17, %v1979_v38  ;;  %v1981_v22 = vld [vmem:[%s4048_s5 + $0x20] sm:$0xff] }
 0x2c2   : > { %2511 = vmatmul.mubr.msk.f32.gmra.mrb[20].mxu1 %vm1839_vm9, %v1830_v12  ;;  %v1982_v12 = vld [vmem:[%s4048_s5 + $0x28] sm:$0xff] }
 0x2c3   : > { %2547 = vmatpush1.bf16.msra.mxu0 %v2546_v14 }
 0x2c4   : > { %2548 = vmatprep.subr.bf16.mxu0 %v2757_v8 }
 0x2c6   : > { %v1577_v0 = vpop.permute.xlu1 %1576  ;;  %v1579_v28 = vpop.permute.xlu0 %1578 }
 0x2c7   : > { %v1786_v61 = vsel %vm1160_vm13, %v1778_v56, %v1577_v0  ;;  %v1787_v35 = vsel %vm1160_vm13, %v1779_v6, %v1579_v28  ;;  %v2549_v0 = vpack.c.bf16 %v1982_v12, %v1981_v22  ;;  %v1984_v28 = vld [vmem:[%s4048_s5 + $0x38] sm:$0xff]  ;;  %v1989_v6 = vld [vmem:[%s4048_s5 + $0x60] sm:$0xff]  ;;  %v1990_v56 = vld [vmem:[%s4048_s5 + $0x68] sm:$0xff] }
 0x2c9   : > { %2550 = vmatpush1.bf16.msra.mxu0 %v2549_v0 }
 0x2ca   : > { %v1625_v45 = vpop.permute.xlu1 %1624  ;;  %v1627_v29 = vpop.permute.xlu0 %1626  ;;  %2551 = vmatprep.subr.bf16.mxu0 %v2757_v8 }
 0x2cb   : > { %v1795_v40 = vsel %vm1788_vm4, %v1786_v61, %v1625_v45  ;;  %v1796_v13 = vsel %vm1788_vm4, %v1787_v35, %v1627_v29  ;;  %v1983_v45 = vld [vmem:[%s4048_s5 + $0x30] sm:$0xff]  ;;  %v1986_v29 = vld [vmem:[%s4048_s5 + $0x48] sm:$0xff]  ;;  %v2561_v61 = vpack.c.bf16 %v1990_v56, %v1989_v6 }
 0x2ce   : > { %v1669_v54 = vpop.permute.xlu1 %1668 }
 0x2cf   : > { %v1804_v55 = vsel %vm1797_vm5, %v1795_v40, %v1669_v54  ;;  %v2552_v54 = vpack.c.bf16 %v1984_v28, %v1983_v45 }
 0x2d1   : > { %2553 = vmatpush1.bf16.msra.mxu0 %v2552_v54 }
 0x2d2   : > { %v1671_v46 = vpop.permute.xlu1 %1670  ;;  %2554 = vmatprep.subr.bf16.mxu0 %v2757_v8 }
 0x2d3   : > { %v1805_v60 = vsel %vm1797_vm5, %v1796_v13, %v1671_v46  ;;  %v1985_v46 = vld [vmem:[%s4048_s5 + $0x40] sm:$0xff]  ;;  %v1991_v13 = vld [vmem:[%s4048_s5 + $0x70] sm:$0xff] }
 0x2d4   : > { %v2555_v21 = vpack.c.bf16 %v1986_v29, %v1985_v46 }
 0x2d6   : > { %2556 = vmatpush1.bf16.msra.mxu0 %v2555_v21 }
 0x2d7   : > { %v1696_v39 = vpop.permute.xlu1 %1695  ;;  %v1694_v33 = vpop.permute.xlu0 %1693  ;;  %2557 = vmatprep.subr.bf16.mxu0 %v2757_v8 }
 0x2d8   : > { %v1814_v49 = vsel %vm1806_vm6, %v1805_v60, %v1696_v39  ;;  %v1813_v51 = vsel %vm1806_vm6, %v1804_v55, %v1694_v33  ;;  %v1987_v39 = vld [vmem:[%s4048_s5 + $0x50] sm:$0xff]  ;;  %v1988_v33 = vld [vmem:[%s4048_s5 + $0x58] sm:$0xff] }
 0x2d9   : > { %v2558_v48 = vpack.c.bf16 %v1988_v33, %v1987_v39  ;;  %v1992_v55 = vld [vmem:[%s4048_s5 + $0x78] sm:$0xff] }
 0x2db   : > { %v1726_v9 = vpop.permute.xlu1 %1725  ;;  %v1724_v57 = vpop.permute.xlu0 %1723  ;;  %2559 = vmatpush1.bf16.msra.mxu0 %v2558_v48 }
 0x2dc   : > { %v1823_v19 = vsel %vm1815_vm7, %v1814_v49, %v1726_v9  ;;  %v1822_v31 = vsel %vm1815_vm7, %v1813_v51, %v1724_v57  ;;  %2560 = vmatprep.subr.bf16.mxu0 %v2757_v8  ;;  %v2564_v49 = vpack.c.bf16 %v1992_v55, %v1991_v13 }
 0x2df   : > { %v1755_v18 = vpop.permute.xlu1 %1754  ;;  %v1753_v47 = vpop.permute.xlu0 %1752  ;;  %2562 = vmatpush1.bf16.msra.mxu0 %v2561_v61 }
 0x2e0   : > { %v1832_v30 = vsel %vm1824_vm8, %v1823_v19, %v1755_v18  ;;  %v1831_v37 = vsel %vm1824_vm8, %v1822_v31, %v1753_v47  ;;  %2563 = vmatprep.subr.bf16.mxu0 %v2757_v8  ;;  %v1993_v18 = vld [vmem:[%s4048_s5 + $0x80] sm:$0xff]  ;;  %v1994_v47 = vld [vmem:[%s4048_s5 + $0x88] sm:$0xff] }
 0x2e1   : > { %2513 = vmatprep.mubr.msk.f32.mxu1 %vm1839_vm9, %v1831_v37  ;;  %v2567_v37 = vpack.c.bf16 %v1994_v47, %v1993_v18 }
 0x2e2   : > { %2514 = vmatmul.mubr.msk.f32.gmra.mrb[22].mxu1 %vm1839_vm9, %v1832_v30 }
 0x2e3   : > { %2565 = vmatpush1.bf16.msra.mxu0 %v2564_v49 }
 0x2e4   : > { %2566 = vmatprep.subr.bf16.mxu0 %v2757_v8 }
 0x2e7   : > { %2568 = vmatpush1.bf16.msra.mxu0 %v2567_v37 }
 0x314   : > { %v2506_v11 = vpop.f32.mrb[16].mxu1 }
 0x315   : > { %v1936_v7 = vadd.f32 %v2506_v11, %v3825_v20  ;;  %v1930_v23 = vpop.f32.mrb[17].mxu1 }
 0x316   : > { %v1931_v34 = vadd.f32 %v3825_v20, %v1930_v23 }
 0x317   : > { %v1970_v50 = vmax.f32 %v1936_v7, 0.0 }
 0x318   : > { %v1969_v52 = vmax.f32 %v1931_v34, 0.0 }
 0x319   : > { %v2005_v41 = vrot.slane %v1970_v50, 7 }
 0x31a   : > { %v2004_v27 = vrot.slane %v1969_v52, 7 }
 0x31b   : > { %v2029_v5 = vsel %vm346_vm0, %v2005_v41, 0.0 }
 0x31c   : > { %v2082_v26 = vrot.slane %v2029_v5, 1  ;;  %v2104_v10 = vrot.slane %v2029_v5, 2  ;;  %v2006_v4 = vsel %vm346_vm0, %v2004_v27, %v2005_v41  ;;  %v2025_v43 = vsel %vm346_vm0, 0.0, %v2004_v27 }
 0x31d   : > { %v2079_v53 = vrot.slane %v2025_v43, 1  ;;  %v2101_v62 = vrot.slane %v2025_v43, 2  ;;  %v2630_v44 = vpack.i.bf16 %v2006_v4, %v2025_v43  ;;  %v2080_v24 = vrot.slane %v2006_v4, 1 }
 0x31e   : > { %v2102_v59 = vrot.slane %v2006_v4, 2 }
 0x31f   : > { %2631 = vrot.lane.b32.xlu0 %v2630_v44, %s2753_s16  ;;  %v2081_v58 = vsel %vm481_vm1, %v2079_v53, %v2080_v24  ;;  %v2083_v3 = vsel %vm481_vm1, %v2080_v24, %v2082_v26 }
 0x320   : > { %v2635_v42 = vpack.i.bf16 %v2083_v3, %v2081_v58  ;;  %v2103_v25 = vsel %vm564_vm2, %v2101_v62, %v2102_v59  ;;  %v2105_v63 = vsel %vm564_vm2, %v2102_v59, %v2104_v10 }
 0x321   : > { %v2640_v32 = vpack.i.bf16 %v2105_v63, %v2103_v25 }
 0x322   : > { %2636 = vrot.lane.b32.xlu1 %v2635_v42, %s2755_s15 }
 0x323   : > { %2641 = vrot.lane.b32.xlu0 %v2640_v32, %s2756_s17 }
 0x351   : > { %v2509_v35 = vpop.f32.mrb[18].mxu1 }
 0x352   : > { %v1946_v9 = vadd.f32 %v2509_v35, %v3825_v20  ;;  %v1940_v57 = vpop.f32.mrb[19].mxu1 }
 0x353   : > { %v1941_v40 = vadd.f32 %v3825_v20, %v1940_v57 }
 0x354   : > { %v1972_v60 = vmax.f32 %v1946_v9, 0.0 }
 0x355   : > { %v1971_v51 = vmax.f32 %v1941_v40, 0.0 }
 0x356   : > { %v2008_v19 = vrot.slane %v1972_v60, 7 }
 0x357   : > { %v2007_v31 = vrot.slane %v1971_v51, 7 }
 0x358   : > { %v2030_v30 = vsel %vm346_vm0, %v2008_v19, 0.0 }
 0x359   : > { %v2038_v11 = vrot.slane %v2030_v30, 1  ;;  %v3897_v7 = vsel %vm346_vm0, %v2007_v31, %v2008_v19  ;;  %v3900_v23 = vsel %vm346_vm0, 0.0, %v2007_v31  ;;  %v2052_v62 = vrot.slane %v2030_v30, 2 }
 0x35a   : > { %v2035_v34 = vrot.slane %v3900_v23, 1  ;;  %v2036_v50 = vrot.slane %v3897_v7, 1  ;;  %v2645_v52 = vpack.i.bf16 %v3897_v7, %v3900_v23  ;;  %v2049_v41 = vrot.slane %v3900_v23, 2 }
 0x35b   : > { %v2050_v27 = vrot.slane %v3897_v7, 2 }
 0x35c   : > { %2646 = vrot.lane.b32.xlu1 %v2645_v52, %s2758_s29  ;;  %v2037_v5 = vsel %vm481_vm1, %v2035_v34, %v2036_v50  ;;  %v2039_v43 = vsel %vm481_vm1, %v2036_v50, %v2038_v11 }
 0x35d   : > { %v2051_v26 = vsel %vm564_vm2, %v2049_v41, %v2050_v27  ;;  %v2650_v10 = vpack.i.bf16 %v2037_v5, %v2850_v1  ;;  %v2660_v53 = vpack.i.bf16 %v2039_v43, %v2037_v5  ;;  %v3920_v44 = vsel %vm564_vm2, %v2050_v27, %v2052_v62 }
 0x35e   : > { %v2655_v4 = vpack.i.bf16 %v2051_v26, %v2855_v2  ;;  %2406 = vmatprep.mubr.msk.f32.mxu0 %vm1772_vm3, %v2051_v26 }
 0x35f   : > { %2651 = vrot.lane.b32.xlu0 %v2650_v10, %s2750_s18 }
 0x360   : > { %2656 = vrot.lane.b32.xlu1 %v2655_v4, %s2752_s23 }
 0x363   : > { %2661 = vrot.lane.b32.xlu0 %v2660_v53, %s2759_s19 }
 0x364   : > { %2044 = vrot.lane.b32.xlu1 %v2039_v43, %s2750_s18  ;;  %s269_s18 = sand.u32 1, %s2729_s25  }
 0x365   : > { %s4001_s22 = scalar_lea.sflag [#allocation3], %s269_s18 }
 0x368   : > { %2058 = vrot.lane.b32.xlu1 %v3920_v44, %s2752_s23 }
 0x391   : > { %v2632_v18 = vpop.permute.xlu0 %2631 }
 0x392   : > { %v2634_v5 = vunpack.i.h.bf16 %v2632_v18  ;;  %v2633_v26 = vunpack.i.l.bf16 %v2632_v18 }
 0x394   : > { %v2637_v47 = vpop.permute.xlu1 %2636 }
 0x395   : > { %v2512_v1 = vpop.f32.mrb[20].mxu1  ;;  %v2642_v30 = vpop.permute.xlu0 %2641  ;;  %v2639_v43 = vunpack.i.h.bf16 %v2637_v47  ;;  %v2638_v53 = vunpack.i.l.bf16 %v2637_v47 }
 0x396   : > { %v1956_v2 = vadd.f32 %v2512_v1, %v3825_v20  ;;  %v1950_v24 = vpop.f32.mrb[21].mxu1 }
 0x397   : > { %v1951_v59 = vadd.f32 %v3825_v20, %v1950_v24  ;;  %v2644_v24 = vunpack.i.h.bf16 %v2642_v30 }
 0x398   : > { %v1974_v58 = vmax.f32 %v1956_v2, 0.0 }
 0x399   : > { %v1973_v3 = vmax.f32 %v1951_v59, 0.0  ;;  %v2643_v59 = vunpack.i.l.bf16 %v2642_v30 }
 0x39a   : > { %v2011_v42 = vrot.slane %v1974_v58, 7 }
 0x39b   : > { %v2010_v25 = vrot.slane %v1973_v3, 7 }
 0x39c   : > { %v2031_v63 = vsel %vm346_vm0, %v2011_v42, 0.0 }
 0x39d   : > { %v2087_v32 = vrot.slane %v2031_v63, 1  ;;  %v2109_v36 = vrot.slane %v2031_v63, 2  ;;  %v2012_v16 = vsel %vm346_vm0, %v2010_v25, %v2011_v42  ;;  %v2027_v15 = vsel %vm346_vm0, 0.0, %v2010_v25 }
 0x39e   : > { %v2084_v8 = vrot.slane %v2027_v15, 1  ;;  %v2106_v38 = vrot.slane %v2027_v15, 2  ;;  %v2665_v17 = vpack.i.bf16 %v2012_v16, %v2027_v15  ;;  %v2085_v14 = vrot.slane %v2012_v16, 1 }
 0x39f   : > { %v2107_v22 = vrot.slane %v2012_v16, 2 }
 0x3a0   : > { %2666 = vrot.lane.b32.xlu1 %v2665_v17, %s2753_s16  ;;  %v2086_v12 = vsel %vm481_vm1, %v2084_v8, %v2085_v14  ;;  %v2088_v0 = vsel %vm481_vm1, %v2085_v14, %v2087_v32 }
 0x3a1   : > { %v2670_v45 = vpack.i.bf16 %v2088_v0, %v2086_v12  ;;  %v2108_v28 = vsel %vm564_vm2, %v2106_v38, %v2107_v22  ;;  %v2110_v54 = vsel %vm564_vm2, %v2107_v22, %v2109_v36 }
 0x3a3   : > { %2671 = vrot.lane.b32.xlu0 %v2670_v45, %s2755_s15  ;;  %s2375_s15 = sshll.u32 %s269_s18, 5 }
 0x3a7   : > { %2115 = vrot.lane.b32.xlu0 %v2108_v28, %s2756_s17 }
 0x3b5   : > { %v2515_v46 = vpop.f32.mrb[22].mxu1 }
 0x3b6   : > { %v1966_v29 = vadd.f32 %v2515_v46, %v3825_v20  ;;  %v1960_v21 = vpop.f32.mrb[23].mxu1 }
 0x3b7   : > { %v1961_v39 = vadd.f32 %v3825_v20, %v1960_v21 }
 0x3b8   : > { %v1976_v33 = vmax.f32 %v1966_v29, 0.0 }
 0x3b9   : > { %v1975_v48 = vmax.f32 %v1961_v39, 0.0 }
 0x3ba   : > { %v2014_v6 = vrot.slane %v1976_v33, 7 }
 0x3bb   : > { %v2013_v56 = vrot.slane %v1975_v48, 7 }
 0x3bc   : > { %v2032_v61 = vsel %vm346_vm0, %v2014_v6, 0.0 }
 0x3bd   : > { %v2140_v35 = vrot.slane %v2032_v61, 1  ;;  %v2157_v9 = vrot.slane %v2032_v61, 2  ;;  %v2015_v57 = vsel %vm346_vm0, %v2013_v56, %v2014_v6  ;;  %v2028_v40 = vsel %vm346_vm0, 0.0, %v2013_v56 }
 0x3be   : > { %2128 = vrot.lane.b32.xlu0 %v2028_v40, %s2758_s29  ;;  %v2137_v13 = vrot.slane %v2028_v40, 1  ;;  %v2154_v55 = vrot.slane %v2028_v40, 2  ;;  %v2138_v60 = vrot.slane %v2015_v57, 1  ;;  %v2155_v49 = vrot.slane %v2015_v57, 2 }
 0x3bf   : > { %vm2173_vm0 = vcmask 654336  }
 0x3c0   : > { %v2139_v20 = vsel %vm481_vm1, %v2137_v13, %v2138_v60  ;;  %v2141_v51 = vsel %vm481_vm1, %v2138_v60, %v2140_v35  ;;  %v2156_v19 = vsel %vm564_vm2, %v2154_v55, %v2155_v49  ;;  %v3946_v31 = vsel %vm564_vm2, %v2155_v49, %v2157_v9 }
 0x3c1   : > { %2146 = vrot.lane.b32.xlu1 %v2139_v20, %s2759_s19  ;;  %vm2178_vm1 = vcmask 785408   ;;  %vm2183_vm2 = vcmask 916480  }
 0x3c2   : > { %2117 = vrot.lane.b32.xlu0 %v2110_v54, %s2756_s17  ;;  %s271_s17 = scalar_lea.vmem [#allocation2], %s2375_s15 }
 0x3c3   : > { %s2309_s21 = sshll.u32 %s271_s17, 4  ;;  %s3993_s21 = int_to_ptr.vmem [resolvable:$true] %s2309_s21 }
 0x3c4   : > { %s2675_s20 = scalar_lea.vmem %s3993_s21, 512 }
 0x3c5   : > { %2130 = vrot.lane.b32.xlu1 %v2015_v57, %s2758_s29  ;;  %p2676_p11 = scmp.ne.s32.totalorder %s3993_s21, %s2675_s20  ;;  %s2679_s29 = sshll.u32 %s2760_s28, 4  ;;  %s2680_s29 = int_to_ptr.vmem [resolvable:$false] %s2679_s29 }
 0x3c6   : > { %2148 = vrot.lane.b32.xlu0 %v2141_v51, %s2759_s19  ;;  %v2405_v51 = vld [vmem:[%s4049_s6] ss:$0 sm:$0xff]  ;;  %s2681_s19 = scalar_lea.vmem %s2680_s29, 1024  ;;  %p2682_p0 = scmp.lt.s32.totalorder %s3993_s21, %s2680_s29 }
 0x3c7   : > { %p2677_p12 = pnand %p2676_p11, %p2840_p5  ;;  %p2683_p1 = scmp.lt.s32.totalorder %s2681_s19, %s2675_s20 }
 0x3c9   : > { %p2678_p13 = pneg %p2677_p12  ;;  %p2684_p2 = por %p2683_p1, %p2682_p0 }
 0x3cb   : > { %p2685_p3 = pnand %p2684_p2, %p2678_p13 }
 0x3ce   : > { %v2647_v37 = vpop.permute.xlu1 %2646 }
 0x3cf   : > { %v2648_v42 = vunpack.i.l.bf16 %v2647_v37  ;;  %v2649_v16 = vunpack.i.h.bf16 %v2647_v37 }
 0x3d1   : > { %v2652_v11 = vpop.permute.xlu0 %2651 }
 0x3d2   : > { %v2654_v34 = vunpack.i.h.bf16 %v2652_v11  ;;  %v2653_v50 = vunpack.i.l.bf16 %v2652_v11  ;;  %v2657_v52 = vpop.permute.xlu1 %2656 }
 0x3d3   : > { %v2659_v41 = vunpack.i.h.bf16 %v2657_v52  ;;  %v2658_v27 = vunpack.i.l.bf16 %v2657_v52 }
 0x3d4   : > { %v2160_v10 = vsel %vm1772_vm3, %v3900_v23, %v2654_v34  ;;  %v2159_v4 = vsel %vm1772_vm3, 0.0, %v2653_v50 }
 0x3d5   : > { %v2162_v62 = vsel %vm1788_vm4, %v2159_v4, %v2658_v27  ;;  %v2163_v1 = vsel %vm1788_vm4, %v2160_v10, %v2659_v41  ;;  %v2662_v2 = vpop.permute.xlu0 %2661 }
 0x3d6   : > { %v2165_v58 = vsel %vm1806_vm6, %v2162_v62, %v2633_v26  ;;  %v2166_v3 = vsel %vm1806_vm6, %v2162_v62, %v2634_v5  ;;  %v2663_v63 = vunpack.i.l.bf16 %v2662_v2  ;;  %v2664_v17 = vunpack.i.h.bf16 %v2662_v2  ;;  %v2045_v22 = vpop.permute.xlu1 %2044 }
 0x3d7   : > { %v2169_v25 = vsel %vm1824_vm8, %v2165_v58, %v2638_v53  ;;  %v2170_v23 = vsel %vm1824_vm8, %v2166_v3, %v2639_v43  ;;  %v2161_v6 = vsel %vm1772_vm3, %v3897_v7, %v2045_v22 }
 0x3d8   : > { %v2174_v32 = vsel %vm2173_vm0, %v2169_v25, %v2643_v59  ;;  %v2175_v36 = vsel %vm2173_vm0, %v2170_v23, %v2644_v24 }
 0x3d9   : > { %v2179_v15 = vsel %vm2178_vm1, %v2174_v32, %v2648_v42  ;;  %v2180_v38 = vsel %vm2178_vm1, %v2175_v36, %v2649_v16 }
 0x3da   : > { %v2184_v8 = vsel %vm2183_vm2, %v2179_v15, %v2663_v63  ;;  %v2185_v14 = vsel %vm2183_vm2, %v2180_v38, %v2664_v17  ;;  %v2059_v12 = vpop.permute.xlu1 %2058 }
 0x3db   : > { %2267 = vmatmul.mubr.f32.vlgmr.msra.gmra.mrb[0].mxu0 %v2184_v8  ;;  %v2164_v35 = vsel %vm1788_vm4, %v2161_v6, %v2059_v12 }
 0x3dc   : > { %2407 = vmatprep.mubr.msk.f32.mxu0 %vm1772_vm3, %v3920_v44 }
 0x3df   : > { %2272 = vmatmul.mubr.f32.gmra.mrb[2].mxu0 %v2185_v14 }
 0x3e0   : > { %2408 = vmatprep.mubr.msk.f32.mxu0 %vm1772_vm3, %v2156_v19 }
 0x412   : > { %v2667_v45 = vpop.permute.xlu1 %2666 }
 0x413   : > { %v2668_v28 = vunpack.i.l.bf16 %v2667_v45  ;;  %v2669_v33 = vunpack.i.h.bf16 %v2667_v45 }
 0x415   : > { %v2672_v0 = vpop.permute.xlu0 %2671  ;;  %v2167_v29 = vsel %vm1806_vm6, %v2163_v1, %v2668_v28  ;;  %v2168_v40 = vsel %vm1806_vm6, %v2164_v35, %v2669_v33 }
 0x416   : > { %v2673_v54 = vunpack.i.l.bf16 %v2672_v0  ;;  %v2674_v48 = vunpack.i.h.bf16 %v2672_v0 }
 0x418   : > { %v2171_v21 = vsel %vm1824_vm8, %v2167_v29, %v2673_v54  ;;  %v2172_v13 = vsel %vm1824_vm8, %v2168_v40, %v2674_v48 }
 0x419   : > { %v2116_v46 = vpop.permute.xlu0 %2115 }
 0x41a   : > { %v2176_v44 = vsel %vm2173_vm0, %v2171_v21, %v2116_v46 }
 0x430   : > { %v2129_v39 = vpop.permute.xlu0 %2128 }
 0x431   : > { %v2181_v56 = vsel %vm2178_vm1, %v2176_v44, %v2129_v39 }
 0x433   : > { %v2147_v61 = vpop.permute.xlu1 %2146 }
 0x434   : > { %v2118_v9 = vpop.permute.xlu0 %2117  ;;  %v2186_v57 = vsel %vm2183_vm2, %v2181_v56, %v2147_v61 }
 0x435   : > { %2277 = vmatmul.mubr.f32.gmra.mrb[4].mxu0 %v2186_v57  ;;  %v2177_v55 = vsel %vm2173_vm0, %v2172_v13, %v2118_v9 }
 0x436   : > { %2409 = vmatprep.mubr.msk.f32.mxu0 %vm1772_vm3, %v3946_v31 }
 0x437   : > { %v2131_v7 = vpop.permute.xlu1 %2130 }
 0x438   : > { %v2182_v60 = vsel %vm2178_vm1, %v2177_v55, %v2131_v7  ;;  %v2149_v49 = vpop.permute.xlu0 %2148 }
 0x439   : > { %v2187_v20 = vsel %vm2183_vm2, %v2182_v60, %v2149_v49 }
 0x43a   : > { %2282 = vmatmul.mubr.f32.gmra.mrb[6].mxu0 %v2187_v20 }
 0x4ae   : > { %v2268_v19 = vpop.f32.mrb[0].mxu0 }
 0x4af   : > { %v2269_v18 = vadd.f32 %v2405_v51, %v2268_v19  ;;  %v2270_v47 = vpop.f32.mrb[1].mxu0 }
 0x4b1   : > { %v2287_v31 = vmax.f32 %v2269_v18, 0.0 }
 0x4b2   : > { %v2273_v30 = vpop.f32.mrb[2].mxu0 }
 0x4b3   : > { %2291 = vst.msk [vmem:[%s271_s17] sm:$0xff] %vm1788_vm4, %v2287_v31  ;;  %v2274_v37 = vadd.f32 %v2405_v51, %v2273_v30  ;;  %v2275_v11 = vpop.f32.mrb[3].mxu0 }
 0x4b5   : > { %v2288_v34 = vmax.f32 %v2274_v37, 0.0 }
 0x4b7   : > { %2292 = vst.msk [vmem:[%s271_s17 + $0x8] sm:$0xff] %vm1788_vm4, %v2288_v34 }
 0x508   : > { %v2278_v50 = vpop.f32.mrb[4].mxu0 }
 0x509   : > { %v2279_v52 = vadd.f32 %v2405_v51, %v2278_v50  ;;  %v2280_v41 = vpop.f32.mrb[5].mxu0 }
 0x50b   : > { %v2289_v27 = vmax.f32 %v2279_v52, 0.0 }
 0x50d   : > { %2293 = vst.msk [vmem:[%s271_s17 + $0x10] sm:$0xff] %vm1788_vm4, %v2289_v27  ;;  %v2283_v5 = vpop.f32.mrb[6].mxu0 }
 0x50e   : > { %v2284_v26 = vadd.f32 %v2405_v51, %v2283_v5  ;;  %v2285_v10 = vpop.f32.mrb[7].mxu0 }
 0x510   : > { %v2290_v4 = vmax.f32 %v2284_v26, 0.0 }
 0x512   : > { %2294 = vst.msk [vmem:[%s271_s17 + $0x18] sm:$0xff] %vm1788_vm4, %v2290_v4 }
 0x513   : > { %2688 = shalt.err (!%p2685_p3)
}
 0x514   : > { %s2689_s18 = scalar_lea.hbm %s3998_s8, 512  ;;  %s2693_s15 = scalar_lea.hbm %s4050_s7, 1024 }
 0x515   : > { %p2690_p4 = scmp.ne.s32.totalorder %s3998_s8, %s2689_s18  ;;  %p2694_p9 = scmp.lt.u32.totalorder %s3998_s8, %s4050_s7 }
 0x516   : > { %p2695_p10 = scmp.lt.u32.totalorder %s2693_s15, %s2689_s18  ;;  %p2697_p12 = scmp.lt.u32.totalorder %s2689_s18, %s3998_s8 }
 0x517   : > { %p2691_p7 = pnand %p2690_p4, %p2840_p5 }
 0x518   : > { %p2696_p11 = por %p2695_p10, %p2694_p9 }
 0x519   : > { %p2692_p8 = pneg %p2691_p7 }
 0x51a   : > { %p2698_p13 = por %p2697_p12, %p2696_p11 }
 0x51c   : > { %p2699_p0 = pnand %p2698_p13, %p2692_p8 }
 0x51e   : > { %2702 = shalt.err (!%p2699_p0)
}
 0x51f   : > { %s2761_s9 = smov 128   ;;  %s4060_s14 = smov 8  }
 0x520   : > { %2569 = dma.vmem_to_hbm [thread:$0]  (%p2840_p5), %s3993_s21, 512, %s3998_s8, %s4001_s22, %s2761_s9, %s2761_s9, %s4060_s14  }
 0x521 PF: > { %p2575_p1 = scmp.ge.s32.totalorder %s2737_s27, 2  ;;  %s2324_s20 = sand.u32 1, %s2725_s24  }
 0x522   : > { %s2325_s28 = scalar_lea.sflag [#allocation3], %s2324_s20 }
 0x523   : > { %p2572_p2 = pnand %p2575_p1, %p2844_p6 }
 0x525   : > { %2720 = dma.done.wait (!%p2572_p2), %s2325_s28, 512  }
 0x526   : > { %2722 = vsyncadd (!%p2572_p2), %s2325_s28, 4294966784  ;;  %p17_p3 = scmp.ge.s32.totalorder %s2827_s30, 4   ;;  %s4061_s24 = smov %s2729_s25 }
 0x527   : > { %s4062_s25 = smov %s2733_s26  ;;  %s4063_s26 = smov %s2838_s10 }
 0x528   : > { %s4064_s27 = smov %s2827_s30  ;;  %19 = sbr.rel (!%p17_p3) target bundleno = 3 (0x3), region = 83 }
 0x52f   :  { %2330 = vsyncpa [#allocation3], 1 }
 0x530   :  { %2332 = vsyncpa [#allocation3 + $0x1], 1 }

</bundles_post_ra>
